<compile_context>
chip_gen: v7x
topology: tpu7x:2x2x1
jax: 0.10.0
libtpu: 0.0.40
codegen_flags: <defaults>
</compile_context>

<pallas_src>
import functools

import jax
import jax.numpy as jnp
import numpy as np
from jax.experimental import pallas as pl
from jax.experimental.pallas import tpu as pltpu


def _round_up(x, m):
    return (x + m - 1) // m * m


def _fmb_conv_kernel(x_ref, w_ref, b_ref, mask_ref, out_ref, stats_ref, *,
                     kh_groups, KW, Cin_pad, Wp, M):
    """One (image, row-tile) grid step.

    x_ref    : (Cin_pad, CW)  flat reflect-padded strip (row tile + halo)
    w_ref    : (Cout, K_pad)  weights, K ordered (kh, kw, cin)
    b_ref    : (Cout, 1)      bias (f32)
    mask_ref : (1, M)         1.0 on valid output columns, 0.0 on wrap columns
    out_ref  : (Cout, M)      conv + bias for this row tile (f32, lane = HW)
    stats_ref: (Cout, 2)      per-image running [sum, sum_sq] over valid cols
    """
    Cout = out_ref.shape[0]
    acc = jnp.zeros((Cout, M), dtype=jnp.float32)

    # conv-as-matmul: build (K_group, M) patch blocks in VMEM from static
    # lane-offset slices of the resident strip and accumulate on the MXU.
    for (g0, g1) in kh_groups:
        taps = []
        for kh in range(g0, g1):
            base = kh * Wp
            for kw in range(KW):
                taps.append(x_ref[:, base + kw:base + kw + M])
        patches = taps[0] if len(taps) == 1 else jnp.concatenate(taps, axis=0)
        wg = w_ref[:, g0 * KW * Cin_pad:g1 * KW * Cin_pad]
        acc = acc + jnp.dot(wg, patches, preferred_element_type=jnp.float32)

    acc = acc + b_ref[...]                       # (Cout, 1) -> (Cout, M)
    out_ref[...] = acc.astype(out_ref.dtype)

    # Fused InstanceNorm statistics (masked sum / sum-of-squares), accumulated
    # across the row-tile ("arbitrary") grid axis in a resident (Cout, 2) block.
    masked = acc * mask_ref[...]
    s1 = jnp.sum(masked, axis=1, keepdims=True)
    s2 = jnp.sum(masked * masked, axis=1, keepdims=True)

    t = pl.program_id(1)

    @pl.when(t == 0)
    def _init():
        stats_ref[...] = jnp.zeros_like(stats_ref)

    stats_ref[:, 0:1] = stats_ref[:, 0:1] + s1
    stats_ref[:, 1:2] = stats_ref[:, 1:2] + s2


def _pick_row_tile(Hout, Wp, m_cap=16384):
    """Largest divisor of Hout giving a lane-aligned tile that fits comfortably."""
    divisors = [d for d in range(1, Hout + 1) if Hout % d == 0]
    valid = [d for d in divisors if d == Hout or (d * Wp) % 128 == 0]
    fitting = [d for d in valid if d * Wp <= m_cap]
    return max(fitting) if fitting else min(valid)


def feature_map_block(x, weight, bias, *, padding, first, eps=1e-5,
                      compute_dtype=jnp.float32, row_tile=None):
    """Forward of FeatureMapBlock.

    x: (N, Cin, H, W) NCHW, weight: (Cout, Cin, KH, KW), bias: (Cout,)
    first=True  -> Conv2d(reflect pad) -> InstanceNorm2d -> ReLU
    first=False -> Conv2d(reflect pad)
    """
    N, Cin, H, W = x.shape
    Cout, Cin_w, KH, KW = weight.shape
    assert Cin_w == Cin

    Hp, Wp = H + 2 * padding, W + 2 * padding
    Hout, Wout = Hp - KH + 1, Wp - KW + 1
    assert Hout > 0 and Wout > 0

    csize = jnp.dtype(compute_dtype).itemsize
    sub_pack = 8 * max(1, 4 // csize)             # 8 rows for f32, 16 for bf16
    Cin_pad = _round_up(Cin, sub_pack)            # tile-aligned sublane concat
    K_pad = KH * KW * Cin_pad

    # ---- row tiling over output rows ----
    if row_tile is None:
        TH = _pick_row_tile(Hout, Wp)
    else:
        TH = int(row_tile)
        if Hout % TH != 0 or not (TH == Hout or (TH * Wp) % 128 == 0):
            raise ValueError("row_tile must divide H_out and give a tile with "
                             "TH*Wp % 128 == 0 (or equal H_out)")
    n_tiles = Hout // TH
    M = TH * Wp                                   # output cols per tile (incl. wrap cols)
    HALO = (KH - 1) * Wp + (KW - 1)
    CW = M + HALO                                 # input strip length per tile

    # ---- cheap glue on the un-expanded input (no 49x patch blow-up) ----
    xp = jnp.pad(x, ((0, 0), (0, 0), (padding, padding), (padding, padding)),
                 mode="reflect")                  # == PyTorch ReflectionPad2d
    if Cin_pad > Cin:
        xp = jnp.pad(xp, ((0, 0), (0, Cin_pad - Cin), (0, 0), (0, 0)))
    xflat = xp.reshape(N, Cin_pad, Hp * Wp)
    if KW > 1:
        xflat = jnp.pad(xflat, ((0, 0), (0, 0), (0, KW - 1)))
    strips = [jax.lax.slice_in_dim(xflat, t * M, t * M + CW, axis=2)
              for t in range(n_tiles)]
    x_chunks = jnp.stack(strips, axis=1).reshape(N * n_tiles, Cin_pad, CW)
    x_chunks = x_chunks.astype(compute_dtype)

    # weight (Cout, Cin, KH, KW) -> (Cout, KH, KW, Cin_pad) -> (Cout, K_pad)
    wt = jnp.transpose(weight, (0, 2, 3, 1))
    if Cin_pad > Cin:
        wt = jnp.pad(wt, ((0, 0), (0, 0), (0, 0), (0, Cin_pad - Cin)))
    w2 = wt.reshape(Cout, K_pad).astype(compute_dtype)
    b2 = bias.reshape(Cout, 1).astype(jnp.float32)

    # column j of a tile is a real output pixel iff (j mod Wp) < Wout; the
    # other ("row-wrap") columns are cheap garbage sliced away below.
    mask = jnp.asarray((np.arange(M) % Wp < Wout).astype(np.float32).reshape(1, M))

    # ---- per-dot tap grouping: bounds VMEM patch temporaries ----
    per_kh_bytes = KW * Cin_pad * M * csize
    g = int(max(1, min(KH, (3 * 2 ** 20) // max(per_kh_bytes, 1))))
    kh_groups = tuple((s, min(s + g, KH)) for s in range(0, KH, g))

    # ---- VMEM footprint estimate -> raise scoped limit only when needed ----
    est = (2 * Cin_pad * CW * csize + Cout * K_pad * csize + Cout * 4 + M * 4
           + 3 * Cout * M * 4 + 2 * g * KW * Cin_pad * M * csize + Cout * 8)
    vmem_limit = 48 * 2 ** 20 if est > 12 * 2 ** 20 else None

    kernel = functools.partial(_fmb_conv_kernel, kh_groups=kh_groups, KW=KW,
                               Cin_pad=Cin_pad, Wp=Wp, M=M)
    cost = pl.CostEstimate(
        flops=int(2 * N * n_tiles * M) * K_pad * Cout,
        transcendentals=0,
        bytes_accessed=int(x_chunks.size * csize + w2.size * csize
                           + (Cout + M) * 4 + N * Cout * (n_tiles * M + 2) * 4))

    conv_flat, stats = pl.pallas_call(
        kernel,
        out_shape=(jax.ShapeDtypeStruct((N, Cout, n_tiles * M), jnp.float32),
                   jax.ShapeDtypeStruct((N, Cout, 2), jnp.float32)),
        grid_spec=pltpu.PrefetchScalarGridSpec(
            num_scalar_prefetch=0,
            grid=(N, n_tiles),
            in_specs=[
                pl.BlockSpec((pl.Squeezed(), Cin_pad, CW),
                             lambda n, t: (n * n_tiles + t, 0, 0)),
                pl.BlockSpec((Cout, K_pad), lambda n, t: (0, 0)),
                pl.BlockSpec((Cout, 1), lambda n, t: (0, 0)),
                pl.BlockSpec((1, M), lambda n, t: (0, 0)),
            ],
            out_specs=[
                pl.BlockSpec((pl.Squeezed(), Cout, M), lambda n, t: (n, 0, t)),
                pl.BlockSpec((pl.Squeezed(), Cout, 2), lambda n, t: (n, 0, 0)),
            ],
        ),
        compiler_params=pltpu.CompilerParams(
            dimension_semantics=("parallel", "arbitrary"),
            vmem_limit_bytes=vmem_limit),
        cost_estimate=cost,
    )(x_chunks, w2, b2, mask)

    # Drop the wrap columns; output is already channel-major (NCHW), no transpose.
    y = conv_flat.reshape(N, Cout, Hout, Wp)[:, :, :, :Wout]

    if first:
        # InstanceNorm2d (biased variance, eps) + ReLU from the fused in-kernel
        # sums; XLA fuses this single elementwise pass with the un-pad slice.
        cnt = float(Hout * Wout)
        mean = stats[:, :, 0] / cnt                                 # (N, Cout)
        var = jnp.maximum(stats[:, :, 1] / cnt - mean * mean, 0.0)  # f32, guarded
        y = (y - mean[:, :, None, None]) * jax.lax.rsqrt(var[:, :, None, None] + eps)
        y = jnp.maximum(y, 0.0)

    return y.astype(x.dtype)


def _reference(x, weight, bias, *, padding, first, eps=1e-5):
    """Pure-JAX reference (lax conv, full f32 precision)."""
    xp = jnp.pad(x, ((0, 0), (0, 0), (padding, padding), (padding, padding)),
                 mode="reflect")
    out = jax.lax.conv_general_dilated(
        xp, weight, window_strides=(1, 1), padding="VALID",
        dimension_numbers=("NCHW", "OIHW", "NCHW"),
        precision=jax.lax.Precision.HIGHEST)
    out = out + bias[None, :, None, None]
    if first:
        mean = out.mean(axis=(2, 3), keepdims=True)
        var = ((out - mean) ** 2).mean(axis=(2, 3), keepdims=True)
        out = (out - mean) * jax.lax.rsqrt(var + eps)
        out = jnp.maximum(out, 0.0)
    return out


if __name__ == "__main__":
    key = jax.random.PRNGKey(0)
    kx, kw_, kb, kx2 = jax.random.split(key, 4)

    # FeatureMapBlock(3, 8, first, kernel_size=7, stride=1, padding=3)
    N, Cin, H, W = 2, 3, 16, 16
    Cout, KS, PAD = 8, 7, 3
    x = jax.random.normal(kx, (N, Cin, H, W), dtype=jnp.float32)
    weight = jax.random.normal(kw_, (Cout, Cin, KS, KS), dtype=jnp.float32) * 0.05
    bias = jax.random.normal(kb, (Cout,), dtype=jnp.float32) * 0.1

    # 1) first=True: Conv2d(reflect) -> InstanceNorm2d -> ReLU  (f32 MXU path)
    y1 = feature_map_block(x, weight, bias, padding=PAD, first=True)
    jax.block_until_ready(y1)
    np.testing.assert_allclose(
        np.asarray(y1),
        np.asarray(_reference(x, weight, bias, padding=PAD, first=True)),
        atol=2e-3, rtol=2e-3)

    # 2) first=False: plain Conv2d(reflect)
    y2 = feature_map_block(x, weight, bias, padding=PAD, first=False)
    jax.block_until_ready(y2)
    np.testing.assert_allclose(
        np.asarray(y2),
        np.asarray(_reference(x, weight, bias, padding=PAD, first=False)),
        atol=2e-3, rtol=2e-3)

    # 3) bf16 MXU operands with f32 accumulation (per-target perf guidance)
    y3 = feature_map_block(x, weight, bias, padding=PAD, first=True,
                           compute_dtype=jnp.bfloat16)
    jax.block_until_ready(y3)
    np.testing.assert_allclose(
        np.asarray(y3),
        np.asarray(_reference(x, weight, bias, padding=PAD, first=True)),
        atol=5e-2, rtol=5e-2)

    # 4) multi row-tile path: grid = (1, 2); InstanceNorm stats accumulate
    #    across the "arbitrary" row-tile axis.
    xl = jax.random.normal(kx2, (1, Cin, 128, 128), dtype=jnp.float32)
    y4 = feature_map_block(xl, weight, bias, padding=PAD, first=True, row_tile=64)
    jax.block_until_ready(y4)
    np.testing.assert_allclose(
        np.asarray(y4),
        np.asarray(_reference(xl, weight, bias, padding=PAD, first=True)),
        atol=2e-3, rtol=2e-3)

    print("KERNEL_OK")
</pallas_src>

<mosaic_0001>
module attributes {stable_mosaic.version = 11 : i64} {
  func.func @_fmb_conv_kernel(%arg0: i32, %arg1: i32, %arg2: memref<1x8x490xf32, #tpu.memory_space<vmem>>, %arg3: memref<8x392xf32, #tpu.memory_space<vmem>>, %arg4: memref<8x1xf32, #tpu.memory_space<vmem>>, %arg5: memref<1x352xf32, #tpu.memory_space<vmem>>, %arg6: memref<1x8x352xf32, #tpu.memory_space<vmem>>, %arg7: memref<1x8x2xf32, #tpu.memory_space<vmem>>) attributes {dimension_semantics = [#tpu.dimension_semantics<parallel>, #tpu.dimension_semantics<arbitrary>], iteration_bounds = array<i64: 2, 1>, scalar_prefetch = 0 : i64, scratch_operands = 0 : i64, tpu.core_type = #tpu.core_type<tc>, window_params = [{transform_indices = @transform_0, window_bounds = array<i64: 1, 8, 490>}, {pipeline_mode = #tpu.pipeline_mode<synchronous>, transform_indices = @transform_1, window_bounds = array<i64: 8, 392>}, {pipeline_mode = #tpu.pipeline_mode<synchronous>, transform_indices = @transform_2, window_bounds = array<i64: 8, 1>}, {pipeline_mode = #tpu.pipeline_mode<synchronous>, transform_indices = @transform_3, window_bounds = array<i64: 1, 352>}, {transform_indices = @transform_4, window_bounds = array<i64: 1, 8, 352>}, {transform_indices = @transform_5, window_bounds = array<i64: 1, 8, 2>}]} {
    %cst = arith.constant 0.000000e+00 : f32
    %0 = vector.broadcast %cst : f32 to vector<8x352xf32>
    %c0 = arith.constant 0 : index
    %c0_0 = arith.constant 0 : index
    %c0_1 = arith.constant 0 : index
    %1 = vector.load %arg2[%c0, %c0_0, %c0_1] : memref<1x8x490xf32, #tpu.memory_space<vmem>>, vector<1x8x352xf32>
    %2 = vector.shape_cast %1 : vector<1x8x352xf32> to vector<8x352xf32>
    %c0_2 = arith.constant 0 : index
    %c0_3 = arith.constant 0 : index
    %c1 = arith.constant 1 : index
    %3 = vector.load %arg2[%c0_2, %c0_3, %c1] : memref<1x8x490xf32, #tpu.memory_space<vmem>>, vector<1x8x352xf32>
    %4 = vector.shape_cast %3 : vector<1x8x352xf32> to vector<8x352xf32>
    %c0_4 = arith.constant 0 : index
    %c0_5 = arith.constant 0 : index
    %c2 = arith.constant 2 : index
    %5 = vector.load %arg2[%c0_4, %c0_5, %c2] : memref<1x8x490xf32, #tpu.memory_space<vmem>>, vector<1x8x352xf32>
    %6 = vector.shape_cast %5 : vector<1x8x352xf32> to vector<8x352xf32>
    %c0_6 = arith.constant 0 : index
    %c0_7 = arith.constant 0 : index
    %c3 = arith.constant 3 : index
    %7 = vector.load %arg2[%c0_6, %c0_7, %c3] : memref<1x8x490xf32, #tpu.memory_space<vmem>>, vector<1x8x352xf32>
    %8 = vector.shape_cast %7 : vector<1x8x352xf32> to vector<8x352xf32>
    %c0_8 = arith.constant 0 : index
    %c0_9 = arith.constant 0 : index
    %c4 = arith.constant 4 : index
    %9 = vector.load %arg2[%c0_8, %c0_9, %c4] : memref<1x8x490xf32, #tpu.memory_space<vmem>>, vector<1x8x352xf32>
    %10 = vector.shape_cast %9 : vector<1x8x352xf32> to vector<8x352xf32>
    %c0_10 = arith.constant 0 : index
    %c0_11 = arith.constant 0 : index
    %c5 = arith.constant 5 : index
    %11 = vector.load %arg2[%c0_10, %c0_11, %c5] : memref<1x8x490xf32, #tpu.memory_space<vmem>>, vector<1x8x352xf32>
    %12 = vector.shape_cast %11 : vector<1x8x352xf32> to vector<8x352xf32>
    %c0_12 = arith.constant 0 : index
    %c0_13 = arith.constant 0 : index
    %c6 = arith.constant 6 : index
    %13 = vector.load %arg2[%c0_12, %c0_13, %c6] : memref<1x8x490xf32, #tpu.memory_space<vmem>>, vector<1x8x352xf32>
    %14 = vector.shape_cast %13 : vector<1x8x352xf32> to vector<8x352xf32>
    %c0_14 = arith.constant 0 : index
    %c0_15 = arith.constant 0 : index
    %c22 = arith.constant 22 : index
    %15 = vector.load %arg2[%c0_14, %c0_15, %c22] : memref<1x8x490xf32, #tpu.memory_space<vmem>>, vector<1x8x352xf32>
    %16 = vector.shape_cast %15 : vector<1x8x352xf32> to vector<8x352xf32>
    %c0_16 = arith.constant 0 : index
    %c0_17 = arith.constant 0 : index
    %c23 = arith.constant 23 : index
    %17 = vector.load %arg2[%c0_16, %c0_17, %c23] : memref<1x8x490xf32, #tpu.memory_space<vmem>>, vector<1x8x352xf32>
    %18 = vector.shape_cast %17 : vector<1x8x352xf32> to vector<8x352xf32>
    %c0_18 = arith.constant 0 : index
    %c0_19 = arith.constant 0 : index
    %c24 = arith.constant 24 : index
    %19 = vector.load %arg2[%c0_18, %c0_19, %c24] : memref<1x8x490xf32, #tpu.memory_space<vmem>>, vector<1x8x352xf32>
    %20 = vector.shape_cast %19 : vector<1x8x352xf32> to vector<8x352xf32>
    %c0_20 = arith.constant 0 : index
    %c0_21 = arith.constant 0 : index
    %c25 = arith.constant 25 : index
    %21 = vector.load %arg2[%c0_20, %c0_21, %c25] : memref<1x8x490xf32, #tpu.memory_space<vmem>>, vector<1x8x352xf32>
    %22 = vector.shape_cast %21 : vector<1x8x352xf32> to vector<8x352xf32>
    %c0_22 = arith.constant 0 : index
    %c0_23 = arith.constant 0 : index
    %c26 = arith.constant 26 : index
    %23 = vector.load %arg2[%c0_22, %c0_23, %c26] : memref<1x8x490xf32, #tpu.memory_space<vmem>>, vector<1x8x352xf32>
    %24 = vector.shape_cast %23 : vector<1x8x352xf32> to vector<8x352xf32>
    %c0_24 = arith.constant 0 : index
    %c0_25 = arith.constant 0 : index
    %c27 = arith.constant 27 : index
    %25 = vector.load %arg2[%c0_24, %c0_25, %c27] : memref<1x8x490xf32, #tpu.memory_space<vmem>>, vector<1x8x352xf32>
    %26 = vector.shape_cast %25 : vector<1x8x352xf32> to vector<8x352xf32>
    %c0_26 = arith.constant 0 : index
    %c0_27 = arith.constant 0 : index
    %c28 = arith.constant 28 : index
    %27 = vector.load %arg2[%c0_26, %c0_27, %c28] : memref<1x8x490xf32, #tpu.memory_space<vmem>>, vector<1x8x352xf32>
    %28 = vector.shape_cast %27 : vector<1x8x352xf32> to vector<8x352xf32>
    %c0_28 = arith.constant 0 : index
    %c0_29 = arith.constant 0 : index
    %c44 = arith.constant 44 : index
    %29 = vector.load %arg2[%c0_28, %c0_29, %c44] : memref<1x8x490xf32, #tpu.memory_space<vmem>>, vector<1x8x352xf32>
    %30 = vector.shape_cast %29 : vector<1x8x352xf32> to vector<8x352xf32>
    %c0_30 = arith.constant 0 : index
    %c0_31 = arith.constant 0 : index
    %c45 = arith.constant 45 : index
    %31 = vector.load %arg2[%c0_30, %c0_31, %c45] : memref<1x8x490xf32, #tpu.memory_space<vmem>>, vector<1x8x352xf32>
    %32 = vector.shape_cast %31 : vector<1x8x352xf32> to vector<8x352xf32>
    %c0_32 = arith.constant 0 : index
    %c0_33 = arith.constant 0 : index
    %c46 = arith.constant 46 : index
    %33 = vector.load %arg2[%c0_32, %c0_33, %c46] : memref<1x8x490xf32, #tpu.memory_space<vmem>>, vector<1x8x352xf32>
    %34 = vector.shape_cast %33 : vector<1x8x352xf32> to vector<8x352xf32>
    %c0_34 = arith.constant 0 : index
    %c0_35 = arith.constant 0 : index
    %c47 = arith.constant 47 : index
    %35 = vector.load %arg2[%c0_34, %c0_35, %c47] : memref<1x8x490xf32, #tpu.memory_space<vmem>>, vector<1x8x352xf32>
    %36 = vector.shape_cast %35 : vector<1x8x352xf32> to vector<8x352xf32>
    %c0_36 = arith.constant 0 : index
    %c0_37 = arith.constant 0 : index
    %c48 = arith.constant 48 : index
    %37 = vector.load %arg2[%c0_36, %c0_37, %c48] : memref<1x8x490xf32, #tpu.memory_space<vmem>>, vector<1x8x352xf32>
    %38 = vector.shape_cast %37 : vector<1x8x352xf32> to vector<8x352xf32>
    %c0_38 = arith.constant 0 : index
    %c0_39 = arith.constant 0 : index
    %c49 = arith.constant 49 : index
    %39 = vector.load %arg2[%c0_38, %c0_39, %c49] : memref<1x8x490xf32, #tpu.memory_space<vmem>>, vector<1x8x352xf32>
    %40 = vector.shape_cast %39 : vector<1x8x352xf32> to vector<8x352xf32>
    %c0_40 = arith.constant 0 : index
    %c0_41 = arith.constant 0 : index
    %c50 = arith.constant 50 : index
    %41 = vector.load %arg2[%c0_40, %c0_41, %c50] : memref<1x8x490xf32, #tpu.memory_space<vmem>>, vector<1x8x352xf32>
    %42 = vector.shape_cast %41 : vector<1x8x352xf32> to vector<8x352xf32>
    %c0_42 = arith.constant 0 : index
    %c0_43 = arith.constant 0 : index
    %c66 = arith.constant 66 : index
    %43 = vector.load %arg2[%c0_42, %c0_43, %c66] : memref<1x8x490xf32, #tpu.memory_space<vmem>>, vector<1x8x352xf32>
    %44 = vector.shape_cast %43 : vector<1x8x352xf32> to vector<8x352xf32>
    %c0_44 = arith.constant 0 : index
    %c0_45 = arith.constant 0 : index
    %c67 = arith.constant 67 : index
    %45 = vector.load %arg2[%c0_44, %c0_45, %c67] : memref<1x8x490xf32, #tpu.memory_space<vmem>>, vector<1x8x352xf32>
    %46 = vector.shape_cast %45 : vector<1x8x352xf32> to vector<8x352xf32>
    %c0_46 = arith.constant 0 : index
    %c0_47 = arith.constant 0 : index
    %c68 = arith.constant 68 : index
    %47 = vector.load %arg2[%c0_46, %c0_47, %c68] : memref<1x8x490xf32, #tpu.memory_space<vmem>>, vector<1x8x352xf32>
    %48 = vector.shape_cast %47 : vector<1x8x352xf32> to vector<8x352xf32>
    %c0_48 = arith.constant 0 : index
    %c0_49 = arith.constant 0 : index
    %c69 = arith.constant 69 : index
    %49 = vector.load %arg2[%c0_48, %c0_49, %c69] : memref<1x8x490xf32, #tpu.memory_space<vmem>>, vector<1x8x352xf32>
    %50 = vector.shape_cast %49 : vector<1x8x352xf32> to vector<8x352xf32>
    %c0_50 = arith.constant 0 : index
    %c0_51 = arith.constant 0 : index
    %c70 = arith.constant 70 : index
    %51 = vector.load %arg2[%c0_50, %c0_51, %c70] : memref<1x8x490xf32, #tpu.memory_space<vmem>>, vector<1x8x352xf32>
    %52 = vector.shape_cast %51 : vector<1x8x352xf32> to vector<8x352xf32>
    %c0_52 = arith.constant 0 : index
    %c0_53 = arith.constant 0 : index
    %c71 = arith.constant 71 : index
    %53 = vector.load %arg2[%c0_52, %c0_53, %c71] : memref<1x8x490xf32, #tpu.memory_space<vmem>>, vector<1x8x352xf32>
    %54 = vector.shape_cast %53 : vector<1x8x352xf32> to vector<8x352xf32>
    %c0_54 = arith.constant 0 : index
    %c0_55 = arith.constant 0 : index
    %c72 = arith.constant 72 : index
    %55 = vector.load %arg2[%c0_54, %c0_55, %c72] : memref<1x8x490xf32, #tpu.memory_space<vmem>>, vector<1x8x352xf32>
    %56 = vector.shape_cast %55 : vector<1x8x352xf32> to vector<8x352xf32>
    %c0_56 = arith.constant 0 : index
    %c0_57 = arith.constant 0 : index
    %c88 = arith.constant 88 : index
    %57 = vector.load %arg2[%c0_56, %c0_57, %c88] : memref<1x8x490xf32, #tpu.memory_space<vmem>>, vector<1x8x352xf32>
    %58 = vector.shape_cast %57 : vector<1x8x352xf32> to vector<8x352xf32>
    %c0_58 = arith.constant 0 : index
    %c0_59 = arith.constant 0 : index
    %c89 = arith.constant 89 : index
    %59 = vector.load %arg2[%c0_58, %c0_59, %c89] : memref<1x8x490xf32, #tpu.memory_space<vmem>>, vector<1x8x352xf32>
    %60 = vector.shape_cast %59 : vector<1x8x352xf32> to vector<8x352xf32>
    %c0_60 = arith.constant 0 : index
    %c0_61 = arith.constant 0 : index
    %c90 = arith.constant 90 : index
    %61 = vector.load %arg2[%c0_60, %c0_61, %c90] : memref<1x8x490xf32, #tpu.memory_space<vmem>>, vector<1x8x352xf32>
    %62 = vector.shape_cast %61 : vector<1x8x352xf32> to vector<8x352xf32>
    %c0_62 = arith.constant 0 : index
    %c0_63 = arith.constant 0 : index
    %c91 = arith.constant 91 : index
    %63 = vector.load %arg2[%c0_62, %c0_63, %c91] : memref<1x8x490xf32, #tpu.memory_space<vmem>>, vector<1x8x352xf32>
    %64 = vector.shape_cast %63 : vector<1x8x352xf32> to vector<8x352xf32>
    %c0_64 = arith.constant 0 : index
    %c0_65 = arith.constant 0 : index
    %c92 = arith.constant 92 : index
    %65 = vector.load %arg2[%c0_64, %c0_65, %c92] : memref<1x8x490xf32, #tpu.memory_space<vmem>>, vector<1x8x352xf32>
    %66 = vector.shape_cast %65 : vector<1x8x352xf32> to vector<8x352xf32>
    %c0_66 = arith.constant 0 : index
    %c0_67 = arith.constant 0 : index
    %c93 = arith.constant 93 : index
    %67 = vector.load %arg2[%c0_66, %c0_67, %c93] : memref<1x8x490xf32, #tpu.memory_space<vmem>>, vector<1x8x352xf32>
    %68 = vector.shape_cast %67 : vector<1x8x352xf32> to vector<8x352xf32>
    %c0_68 = arith.constant 0 : index
    %c0_69 = arith.constant 0 : index
    %c94 = arith.constant 94 : index
    %69 = vector.load %arg2[%c0_68, %c0_69, %c94] : memref<1x8x490xf32, #tpu.memory_space<vmem>>, vector<1x8x352xf32>
    %70 = vector.shape_cast %69 : vector<1x8x352xf32> to vector<8x352xf32>
    %c0_70 = arith.constant 0 : index
    %c0_71 = arith.constant 0 : index
    %c110 = arith.constant 110 : index
    %71 = vector.load %arg2[%c0_70, %c0_71, %c110] : memref<1x8x490xf32, #tpu.memory_space<vmem>>, vector<1x8x352xf32>
    %72 = vector.shape_cast %71 : vector<1x8x352xf32> to vector<8x352xf32>
    %c0_72 = arith.constant 0 : index
    %c0_73 = arith.constant 0 : index
    %c111 = arith.constant 111 : index
    %73 = vector.load %arg2[%c0_72, %c0_73, %c111] : memref<1x8x490xf32, #tpu.memory_space<vmem>>, vector<1x8x352xf32>
    %74 = vector.shape_cast %73 : vector<1x8x352xf32> to vector<8x352xf32>
    %c0_74 = arith.constant 0 : index
    %c0_75 = arith.constant 0 : index
    %c112 = arith.constant 112 : index
    %75 = vector.load %arg2[%c0_74, %c0_75, %c112] : memref<1x8x490xf32, #tpu.memory_space<vmem>>, vector<1x8x352xf32>
    %76 = vector.shape_cast %75 : vector<1x8x352xf32> to vector<8x352xf32>
    %c0_76 = arith.constant 0 : index
    %c0_77 = arith.constant 0 : index
    %c113 = arith.constant 113 : index
    %77 = vector.load %arg2[%c0_76, %c0_77, %c113] : memref<1x8x490xf32, #tpu.memory_space<vmem>>, vector<1x8x352xf32>
    %78 = vector.shape_cast %77 : vector<1x8x352xf32> to vector<8x352xf32>
    %c0_78 = arith.constant 0 : index
    %c0_79 = arith.constant 0 : index
    %c114 = arith.constant 114 : index
    %79 = vector.load %arg2[%c0_78, %c0_79, %c114] : memref<1x8x490xf32, #tpu.memory_space<vmem>>, vector<1x8x352xf32>
    %80 = vector.shape_cast %79 : vector<1x8x352xf32> to vector<8x352xf32>
    %c0_80 = arith.constant 0 : index
    %c0_81 = arith.constant 0 : index
    %c115 = arith.constant 115 : index
    %81 = vector.load %arg2[%c0_80, %c0_81, %c115] : memref<1x8x490xf32, #tpu.memory_space<vmem>>, vector<1x8x352xf32>
    %82 = vector.shape_cast %81 : vector<1x8x352xf32> to vector<8x352xf32>
    %c0_82 = arith.constant 0 : index
    %c0_83 = arith.constant 0 : index
    %c116 = arith.constant 116 : index
    %83 = vector.load %arg2[%c0_82, %c0_83, %c116] : memref<1x8x490xf32, #tpu.memory_space<vmem>>, vector<1x8x352xf32>
    %84 = vector.shape_cast %83 : vector<1x8x352xf32> to vector<8x352xf32>
    %c0_84 = arith.constant 0 : index
    %c0_85 = arith.constant 0 : index
    %c132 = arith.constant 132 : index
    %85 = vector.load %arg2[%c0_84, %c0_85, %c132] : memref<1x8x490xf32, #tpu.memory_space<vmem>>, vector<1x8x352xf32>
    %86 = vector.shape_cast %85 : vector<1x8x352xf32> to vector<8x352xf32>
    %c0_86 = arith.constant 0 : index
    %c0_87 = arith.constant 0 : index
    %c133 = arith.constant 133 : index
    %87 = vector.load %arg2[%c0_86, %c0_87, %c133] : memref<1x8x490xf32, #tpu.memory_space<vmem>>, vector<1x8x352xf32>
    %88 = vector.shape_cast %87 : vector<1x8x352xf32> to vector<8x352xf32>
    %c0_88 = arith.constant 0 : index
    %c0_89 = arith.constant 0 : index
    %c134 = arith.constant 134 : index
    %89 = vector.load %arg2[%c0_88, %c0_89, %c134] : memref<1x8x490xf32, #tpu.memory_space<vmem>>, vector<1x8x352xf32>
    %90 = vector.shape_cast %89 : vector<1x8x352xf32> to vector<8x352xf32>
    %c0_90 = arith.constant 0 : index
    %c0_91 = arith.constant 0 : index
    %c135 = arith.constant 135 : index
    %91 = vector.load %arg2[%c0_90, %c0_91, %c135] : memref<1x8x490xf32, #tpu.memory_space<vmem>>, vector<1x8x352xf32>
    %92 = vector.shape_cast %91 : vector<1x8x352xf32> to vector<8x352xf32>
    %c0_92 = arith.constant 0 : index
    %c0_93 = arith.constant 0 : index
    %c136 = arith.constant 136 : index
    %93 = vector.load %arg2[%c0_92, %c0_93, %c136] : memref<1x8x490xf32, #tpu.memory_space<vmem>>, vector<1x8x352xf32>
    %94 = vector.shape_cast %93 : vector<1x8x352xf32> to vector<8x352xf32>
    %c0_94 = arith.constant 0 : index
    %c0_95 = arith.constant 0 : index
    %c137 = arith.constant 137 : index
    %95 = vector.load %arg2[%c0_94, %c0_95, %c137] : memref<1x8x490xf32, #tpu.memory_space<vmem>>, vector<1x8x352xf32>
    %96 = vector.shape_cast %95 : vector<1x8x352xf32> to vector<8x352xf32>
    %c0_96 = arith.constant 0 : index
    %c0_97 = arith.constant 0 : index
    %c138 = arith.constant 138 : index
    %97 = vector.load %arg2[%c0_96, %c0_97, %c138] : memref<1x8x490xf32, #tpu.memory_space<vmem>>, vector<1x8x352xf32>
    %98 = vector.shape_cast %97 : vector<1x8x352xf32> to vector<8x352xf32>
    %99 = tpu.concatenate %2, %4, %6, %8, %10, %12, %14, %16, %18, %20, %22, %24, %26, %28, %30, %32 in 0 : vector<8x352xf32>, vector<8x352xf32>, vector<8x352xf32>, vector<8x352xf32>, vector<8x352xf32>, vector<8x352xf32>, vector<8x352xf32>, vector<8x352xf32>, vector<8x352xf32>, vector<8x352xf32>, vector<8x352xf32>, vector<8x352xf32>, vector<8x352xf32>, vector<8x352xf32>, vector<8x352xf32>, vector<8x352xf32> -> vector<128x352xf32>
    %100 = tpu.concatenate %34, %36, %38, %40, %42, %44, %46, %48, %50, %52, %54, %56, %58, %60, %62, %64 in 0 : vector<8x352xf32>, vector<8x352xf32>, vector<8x352xf32>, vector<8x352xf32>, vector<8x352xf32>, vector<8x352xf32>, vector<8x352xf32>, vector<8x352xf32>, vector<8x352xf32>, vector<8x352xf32>, vector<8x352xf32>, vector<8x352xf32>, vector<8x352xf32>, vector<8x352xf32>, vector<8x352xf32>, vector<8x352xf32> -> vector<128x352xf32>
    %101 = tpu.concatenate %66, %68, %70, %72, %74, %76, %78, %80, %82, %84, %86, %88, %90, %92, %94, %96 in 0 : vector<8x352xf32>, vector<8x352xf32>, vector<8x352xf32>, vector<8x352xf32>, vector<8x352xf32>, vector<8x352xf32>, vector<8x352xf32>, vector<8x352xf32>, vector<8x352xf32>, vector<8x352xf32>, vector<8x352xf32>, vector<8x352xf32>, vector<8x352xf32>, vector<8x352xf32>, vector<8x352xf32>, vector<8x352xf32> -> vector<128x352xf32>
    %102 = tpu.concatenate %99, %100, %101, %98 in 0 : vector<128x352xf32>, vector<128x352xf32>, vector<128x352xf32>, vector<8x352xf32> -> vector<392x352xf32>
    %c0_98 = arith.constant 0 : index
    %c0_99 = arith.constant 0 : index
    %103 = vector.load %arg3[%c0_98, %c0_99] : memref<8x392xf32, #tpu.memory_space<vmem>>, vector<8x392xf32>
    %cst_100 = arith.constant dense<0.000000e+00> : vector<8x352xf32>
    %104 = tpu.matmul %103, %102, %cst_100 {dimension_numbers = #tpu.dot_dimension_numbers<[1], [0], [0], [1], [0, 0, 1, 1], [], []>} : vector<8x392xf32>, vector<392x352xf32>, vector<8x352xf32> -> vector<8x352xf32>
    %105 = arith.addf %0, %104 : vector<8x352xf32>
    %c0_101 = arith.constant 0 : index
    %c0_102 = arith.constant 0 : index
    %106 = vector.load %arg4[%c0_101, %c0_102] : memref<8x1xf32, #tpu.memory_space<vmem>>, vector<8x1xf32>
    %107 = vector.broadcast %106 : vector<8x1xf32> to vector<8x352xf32>
    %108 = arith.addf %105, %107 : vector<8x352xf32>
    %c0_103 = arith.constant 0 : index
    %c0_104 = arith.constant 0 : index
    %c0_105 = arith.constant 0 : index
    %109 = vector.load %arg6[%c0_103, %c0_104, %c0_105] : memref<1x8x352xf32, #tpu.memory_space<vmem>>, vector<1x8x352xf32>
    %110 = vector.shape_cast %109 : vector<1x8x352xf32> to vector<8x352xf32>
    %111 = vector.shape_cast %108 : vector<8x352xf32> to vector<1x8x352xf32>
    tpu.vector_store %arg6[%c0_103, %c0_104, %c0_105], %111 {strides = array<i32>} : memref<1x8x352xf32, #tpu.memory_space<vmem>>, vector<1x8x352xf32>,
    %c0_106 = arith.constant 0 : index
    %c0_107 = arith.constant 0 : index
    %112 = vector.load %arg5[%c0_106, %c0_107] : memref<1x352xf32, #tpu.memory_space<vmem>>, vector<1x352xf32>
    %113 = vector.broadcast %112 : vector<1x352xf32> to vector<8x352xf32>
    %114 = arith.mulf %108, %113 : vector<8x352xf32>
    %cst_108 = arith.constant dense<0.000000e+00> : vector<8xf32>
    %115 = vector.multi_reduction <add>, %114, %cst_108 [1] : vector<8x352xf32> to vector<8xf32>
    %116 = vector.shape_cast %115 : vector<8xf32> to vector<8x1xf32>
    %117 = arith.mulf %114, %114 : vector<8x352xf32>
    %cst_109 = arith.constant dense<0.000000e+00> : vector<8xf32>
    %118 = vector.multi_reduction <add>, %117, %cst_109 [1] : vector<8x352xf32> to vector<8xf32>
    %119 = vector.shape_cast %118 : vector<8xf32> to vector<8x1xf32>
    %c0_i32 = arith.constant 0 : i32
    %120 = arith.cmpi eq, %arg1, %c0_i32 : i32
    %121 = arith.extui %120 : i1 to i32
    %c0_i32_110 = arith.constant 0 : i32
    %122 = arith.cmpi ne, %121, %c0_i32_110 : i32
    scf.if %122 {
      %cst_123 = arith.constant 0.000000e+00 : f32
      %135 = vector.broadcast %cst_123 : f32 to vector<8x2xf32>
      %c0_124 = arith.constant 0 : index
      %c0_125 = arith.constant 0 : index
      %c0_126 = arith.constant 0 : index
      %136 = vector.load %arg7[%c0_124, %c0_125, %c0_126] : memref<1x8x2xf32, #tpu.memory_space<vmem>>, vector<1x8x2xf32>
      %137 = vector.shape_cast %136 : vector<1x8x2xf32> to vector<8x2xf32>
      %138 = vector.shape_cast %135 : vector<8x2xf32> to vector<1x8x2xf32>
      tpu.vector_store %arg7[%c0_124, %c0_125, %c0_126], %138 {strides = array<i32>} : memref<1x8x2xf32, #tpu.memory_space<vmem>>, vector<1x8x2xf32>,
    } else {
    }
    %c0_111 = arith.constant 0 : index
    %c0_112 = arith.constant 0 : index
    %c0_113 = arith.constant 0 : index
    %123 = vector.load %arg7[%c0_111, %c0_112, %c0_113] : memref<1x8x2xf32, #tpu.memory_space<vmem>>, vector<1x8x1xf32>
    %124 = vector.shape_cast %123 : vector<1x8x1xf32> to vector<8x1xf32>
    %125 = arith.addf %124, %116 : vector<8x1xf32>
    %c0_114 = arith.constant 0 : index
    %c0_115 = arith.constant 0 : index
    %c0_116 = arith.constant 0 : index
    %126 = vector.load %arg7[%c0_114, %c0_115, %c0_116] : memref<1x8x2xf32, #tpu.memory_space<vmem>>, vector<1x8x1xf32>
    %127 = vector.shape_cast %126 : vector<1x8x1xf32> to vector<8x1xf32>
    %128 = vector.shape_cast %125 : vector<8x1xf32> to vector<1x8x1xf32>
    tpu.vector_store %arg7[%c0_114, %c0_115, %c0_116], %128 {strides = array<i32>} : memref<1x8x2xf32, #tpu.memory_space<vmem>>, vector<1x8x1xf32>,
    %c0_117 = arith.constant 0 : index
    %c0_118 = arith.constant 0 : index
    %c1_119 = arith.constant 1 : index
    %129 = vector.load %arg7[%c0_117, %c0_118, %c1_119] : memref<1x8x2xf32, #tpu.memory_space<vmem>>, vector<1x8x1xf32>
    %130 = vector.shape_cast %129 : vector<1x8x1xf32> to vector<8x1xf32>
    %131 = arith.addf %130, %119 : vector<8x1xf32>
    %c0_120 = arith.constant 0 : index
    %c0_121 = arith.constant 0 : index
    %c1_122 = arith.constant 1 : index
    %132 = vector.load %arg7[%c0_120, %c0_121, %c1_122] : memref<1x8x2xf32, #tpu.memory_space<vmem>>, vector<1x8x1xf32>
    %133 = vector.shape_cast %132 : vector<1x8x1xf32> to vector<8x1xf32>
    %134 = vector.shape_cast %131 : vector<8x1xf32> to vector<1x8x1xf32>
    tpu.vector_store %arg7[%c0_120, %c0_121, %c1_122], %134 {strides = array<i32>} : memref<1x8x2xf32, #tpu.memory_space<vmem>>, vector<1x8x1xf32>,
    return
  }
  func.func @transform_0(%arg0: i32, %arg1: i32) -> (i32, i32, i32) {
    %c1_i32 = arith.constant 1 : i32
    %0 = arith.muli %arg0, %c1_i32 : i32
    %1 = arith.addi %0, %arg1 : i32
    %c0_i32 = arith.constant 0 : i32
    %c0_i32_0 = arith.constant 0 : i32
    %c0_i32_1 = arith.constant 0 : i32
    return %1, %c0_i32, %c0_i32_0 : i32, i32, i32
  }
  func.func @transform_1(%arg0: i32, %arg1: i32) -> (i32, i32) {
    %c0_i32 = arith.constant 0 : i32
    %c0_i32_0 = arith.constant 0 : i32
    %c0_i32_1 = arith.constant 0 : i32
    return %c0_i32, %c0_i32_0 : i32, i32
  }
  func.func @transform_2(%arg0: i32, %arg1: i32) -> (i32, i32) {
    %c0_i32 = arith.constant 0 : i32
    %c0_i32_0 = arith.constant 0 : i32
    %c0_i32_1 = arith.constant 0 : i32
    return %c0_i32, %c0_i32_0 : i32, i32
  }
  func.func @transform_3(%arg0: i32, %arg1: i32) -> (i32, i32) {
    %c0_i32 = arith.constant 0 : i32
    %c0_i32_0 = arith.constant 0 : i32
    %c0_i32_1 = arith.constant 0 : i32
    return %c0_i32, %c0_i32_0 : i32, i32
  }
  func.func @transform_4(%arg0: i32, %arg1: i32) -> (i32, i32, i32) {
    %c0_i32 = arith.constant 0 : i32
    %c0_i32_0 = arith.constant 0 : i32
    return %arg0, %c0_i32, %arg1 : i32, i32, i32
  }
  func.func @transform_5(%arg0: i32, %arg1: i32) -> (i32, i32, i32) {
    %c0_i32 = arith.constant 0 : i32
    %c0_i32_0 = arith.constant 0 : i32
    %c0_i32_1 = arith.constant 0 : i32
    return %arg0, %c0_i32, %c0_i32_0 : i32, i32, i32
  }
}

</mosaic_0001>

<bundles_post_ra>
// kernel: tpu_custom_call.1
= control target key start
LH: loop header
LB: loop body
LE: loop exit
PB: predicated region body
PF: predicated region fallthrough
CT: control target
= control target key end

     0   :  { %11 = vsyncpa [#allocation3], 0  ;;  %s3488_s0 = inlined_call_operand.hbm [shape: f32[2,8,490], index: 0, kind: input, shape index: {}]   ;;  %s3489_s1 = inlined_call_operand.hbm [shape: f32[8,392], index: 1, kind: input, shape index: {}]   ;;  %s3490_s2 = inlined_call_operand.vmem [shape: f32[8,1], index: 2, kind: input, shape index: {}]   ;;  %s3491_s3 = inlined_call_operand.vmem [shape: f32[1,352], index: 3, kind: input, shape index: {}]   ;;  %s3492_s4 = inlined_call_operand.hbm [shape: f32[2,8,352], index: 4, kind: output, shape index: {0}]   ;;  %s3493_s5 = inlined_call_operand.vmem [shape: f32[2,8,2], index: 5, kind: output, shape index: {1}]  }
   0x1   :  { %13 = vsyncpa [#allocation3 + $0x1], 0 }
   0x2   :  { %14 = vsyncpa [#allocation6], 0 }
   0x3   :  { %15 = vsyncpa [#allocation4], 0 }
   0x4   :  { %17 = vsyncpa [#allocation4 + $0x1], 0  ;;  %s2589_s18 = smov 0   ;;  %s2591_s19 = smov 0  }
   0x5   :  { %s2593_s20 = smov 0   ;;  %s2595_s21 = smov 0  }
   0x6   :  { %s2597_s22 = smov 0   ;;  %s2599_s23 = smov 0  }
   0x7 LB: > { %s1544_s24 = sadd.s32 4294967295, %s2525_s23   ;;  %s1545_s25 = sadd.s32 4294967294, %s2525_s23   ;;  %s2525_s23 = sphi %s2599_s23, %s23_s23   ;;  %s2521_s22 = sphi %s2597_s22, %s3544_s22   ;;  %s2517_s21 = sphi %s2595_s21, %s3543_s21   ;;  %s2513_s20 = sphi %s2593_s20, %s3542_s20   ;;  %s2509_s19 = sphi %s2591_s19, %s3541_s19   ;;  %s2505_s18 = sphi %s2589_s18, %s3540_s18  }
   0x8   : > { %p57_p0 = scmp.ne.s32.totalorder %s2509_s19, %s2505_s18  ;;  %p2623_p1 = scmp.eq.s32.totalorder %s1544_s24, 0 }
   0x9   : > { %p2627_p2 = scmp.eq.s32.totalorder %s1544_s24, 1  ;;  %p152_p3 = scmp.eq.s32.totalorder %s1545_s25, 1 }
   0xa   : > { %s3505_s26 = scalar_select %p2623_p1, 1, 0 }
   0xb   : > { %s3506_s27 = scalar_select %p2627_p2, 1, 0 }
   0xc   : > { %p2633_p4 = por %p2623_p1, %p57_p0  ;;  %p1546_p5 = scmp.ge.s32.totalorder %s2525_s23, 1 }
   0xd   : > { %p2638_p6 = por %p152_p3, %p57_p0  ;;  %p185_p7 = scmp.lt.s32.totalorder %s2525_s23, 3 }
   0xe   : > { %s3507_s28 = scalar_select %p2633_p4, 1, 0 }
   0xf   : > { %s3508_s29 = scalar_select %p2638_p6, 1, 0 }
  0x10   : > { %p2643_p8 = pnand %p1546_p5, %p185_p7  ;;  %s2527_s6 = smov [#allocation5]  }
  0x11   : > { %s198_s7 = sshll.u32 %s2527_s6, 4  ;;  %s35_s9 = sadd.s32 1, %s2521_s22  ;;  %s199_s7 = int_to_ptr.vmem [resolvable:$true] %s198_s7 }
  0x12   : > { %s3509_s30 = scalar_select %p2643_p8, 1, 0 }
  0x13   : > { %p1763_p10 = pneg %p2643_p8  ;;  %s44_s10 = sadd.s32 1, %s2513_s20 }
  0x14   : > { %p2658_p12 = scmp.ge.s32.totalorder %s35_s9, 2  ;;  %s2381_s14 = scalar_lea.hbm %s3489_s1, 512 }
  0x15   : > { %p2652_p11 = pnand %p1763_p10, %p2623_p1  ;;  %p2382_p13 = scmp.ne.s32.totalorder %s3489_s1, %s2381_s14 }
  0x16   : > { %s3511_s11 = scalar_select %p2658_p12, 1, 0 }
  0x17   : > { %p2383_p0 = pneg %p2652_p11  ;;  %p2388_p7 = scmp.lt.u32.totalorder %s2381_s14, %s3489_s1 }
  0x19   : > { %p2384_p3 = pnand %p2383_p0, %p2382_p13 }
  0x1b   : > { %p2385_p5 = pneg %p2384_p3 }
  0x1d   : > { %p2390_p10 = pnand %p2388_p7, %p2385_p5 }
  0x1f   : > { %2393 = shalt.err (!%p2390_p10)
}
  0x20   : > { %s2394_s25 = scalar_lea.vmem %s199_s7, 512  ;;  %p2402_p4 = scmp.lt.s32.totalorder %s199_s7, %s199_s7 }
  0x21   : > { %p2395_p9 = scmp.ne.s32.totalorder %s199_s7, %s2394_s25  ;;  %p2403_p8 = scmp.lt.s32.totalorder %s2394_s25, %s2394_s25 }
  0x23   : > { %p2397_p6 = pnand %p2395_p9, %p2383_p0  ;;  %p2404_p2 = por %p2403_p8, %p2402_p4 }
  0x25   : > { %p2398_p1 = pneg %p2397_p6 }
  0x27   : > { %p2405_p12 = pnand %p2404_p2, %p2398_p1 }
  0x29   : > { %2408 = shalt.err (!%p2405_p12)
}
  0x2a   : > { %1766 = dma.hbm_to_vmem [thread:$0]  (!%p2652_p11), %s3489_s1, 512, %s199_s7, [#allocation6]  }
  0x2b   : > { %p3512_p4 = scmp.ne.s32.totalorder %s3511_s11, 0  ;;  %p51_p1 = scmp.ne.s32.totalorder %s2513_s20, %s2509_s19 }
  0x2c   : > { %p52_p2 = scmp.eq.s32.totalorder %s2525_s23, 0  ;;  %p1776_p6 = scmp.lt.s32.totalorder %s2525_s23, 2 }
  0x2d   : > { %s3546_s9 = smov (%p3512_p4, %s35_s9), 0  ;;  %p3513_p12 = scmp.ne.s32.totalorder %s3506_s27, 0 }
  0x2e   : > { %s41_s8 = ssub.s32 %s2521_s22, %s3546_s9  ;;  %p53_p9 = por %p52_p2, %p51_p1 }
  0x2f   : > { %p42_p8 = scmp.eq.s32.totalorder %s41_s8, 0  ;;  %p2690_p13 = por %p3513_p12, %p51_p1 }
  0x30   : > { %s215_s14 = sand.u32 1, %s2513_s20   ;;  %s1561_s11 = sshll.u32 %s2521_s22, 9 }
  0x31   : > { %s2698_s15 = scalar_select %p42_p8, %s2513_s20, %s44_s10  }
  0x32   : > { %s1549_s7 = sshll.u32 %s215_s14, 5  ;;  %s2704_s24 = scalar_lea.hbm %s3488_s0, %s1561_s11 }
  0x33   : > { %s219_s27 = scalar_lea.vmem [#allocation2], %s1549_s7  ;;  %p2708_p11 = pnand %p1776_p6, %p53_p9 }
  0x34   : > { %s228_s25 = sshll.u32 %s219_s27, 4  ;;  %s216_s10 = scalar_lea.sflag [#allocation3], %s215_s14  ;;  %s2706_s25 = int_to_ptr.vmem [resolvable:$true] %s228_s25 }
  0x35   : > { %s2409_s12 = scalar_lea.hbm %s2704_s24, 512  ;;  %p2411_p3 = pneg %p2708_p11 }
  0x36   : > { %p2410_p0 = scmp.ne.s32.totalorder %s2704_s24, %s2409_s12  ;;  %s2414_s11 = scalar_lea.hbm %s3488_s0, 1024 }
  0x37   : > { %p2415_p10 = scmp.lt.u32.totalorder %s2704_s24, %s3488_s0  ;;  %p2416_p4 = scmp.lt.u32.totalorder %s2414_s11, %s2409_s12 }
  0x38   : > { %p2412_p5 = pnand %p2411_p3, %p2410_p0  ;;  %p2418_p2 = scmp.lt.u32.totalorder %s2409_s12, %s2704_s24 }
  0x39   : > { %p2417_p1 = por %p2416_p4, %p2415_p10 }
  0x3a   : > { %p2413_p7 = pneg %p2412_p5 }
  0x3b   : > { %p2419_p6 = por %p2418_p2, %p2417_p1 }
  0x3d   : > { %p2420_p8 = pnand %p2419_p6, %p2413_p7 }
  0x3f   : > { %2423 = shalt.err (!%p2420_p8)
}
  0x40   : > { %s2424_s14 = scalar_lea.vmem %s2706_s25, 512  ;;  %s2528_s27 = smov [#allocation2]  }
  0x41   : > { %p2425_p9 = scmp.ne.s32.totalorder %s2706_s25, %s2424_s14  ;;  %s2429_s8 = sshll.u32 %s2528_s27, 4  ;;  %s2430_s8 = int_to_ptr.vmem [resolvable:$false] %s2429_s8 }
  0x42   : > { %s2431_s7 = scalar_lea.vmem %s2430_s8, 1024  ;;  %p2432_p5 = scmp.lt.s32.totalorder %s2706_s25, %s2430_s8 }
  0x43   : > { %p2427_p12 = pnand %p2425_p9, %p2411_p3  ;;  %p2433_p10 = scmp.lt.s32.totalorder %s2431_s7, %s2424_s14 }
  0x45   : > { %p2428_p0 = pneg %p2427_p12  ;;  %p2434_p4 = por %p2433_p10, %p2432_p5 }
  0x47   : > { %p2435_p1 = pnand %p2434_p4, %p2428_p0 }
  0x49   : > { %2438 = shalt.err (!%p2435_p1)
}
  0x4a   : > { %1770 = dma.hbm_to_vmem [thread:$0]  (!%p2708_p11), %s2704_s24, 512, %s2706_s25, %s216_s10  }
  0x4b   : > { %p3516_p7 = scmp.ne.s32.totalorder %s3509_s30, 0 }
  0x4d   : > { %237 = sbr.rel (%p3516_p7) target bundleno = 848 (0x350), region = 36 }
  0x54   : > { %s2740_s12 = sand.u32 1, %s2509_s19   ;;  %p3517_p3 = scmp.ne.s32.totalorder %s3507_s28, 0 }
  0x55   : > { %s1553_s11 = sshll.u32 %s2740_s12, 5  ;;  %s240_s16 = scalar_lea.sflag [#allocation3], %s2740_s12 }
  0x56   : > { %s2744_s17 = scalar_lea.vmem [#allocation2], %s1553_s11 }
  0x57   : > { %2492 = dma.done.wait (%p3517_p3), %s240_s16, 512  }
  0x58   : > { %2494 = vsyncadd (%p3517_p3), %s240_s16, 4294966784  ;;  %p3518_p11 = scmp.ne.s32.totalorder %s3505_s26, 0 }
  0x5a   : > { %2496 = dma.done.wait (%p3518_p11), [#allocation6], 512  }
  0x5b   : > { %2498 = vsyncadd (%p3518_p11), [#allocation6], 4294966784  ;;  %v2755_v0 = vld [vmem:[%s2744_s17 + $0x8] sm:$0xff]  ;;  %v2758_v1 = vld [vmem:[%s2744_s17 + $0x10] sm:$0xff]  ;;  %s2529_s28 = smov 126   ;;  %s2530_s26 = smov 127  }
  0x5c   : > { %v2761_v2 = vld [vmem:[%s2744_s17] sm:$0xff]  ;;  %v2765_v3 = vpack.i.bf16 %v2758_v1, %v2755_v0  ;;  %v2768_v4 = vld [vmem:[%s2744_s17 + $0x18] sm:$0xff]  ;;  %s2531_s30 = smov 125   ;;  %s2532_s24 = smov 124   ;;  %vm297_vm0 = vcmask 1039360   ;;  %vm309_vm1 = vcmask 1031168  }
  0x5d   : > { %v1862_v5 = vpack.i.bf16 %v2761_v2, %v2768_v4  ;;  %s2533_s25 = smov 108   ;;  %s2534_s6 = smov 107   ;;  %vm321_vm2 = vcmask 1022976   ;;  %vm333_vm3 = vcmask 1014784   ;;  %vm498_vm4 = vcmask 883712  }
  0x5e   : > { %1868 = vrot.lane.b32.xlu1 %v2765_v3, %s2529_s28  ;;  %1858 = vrot.lane.b32.xlu0 %v2765_v3, %s2530_s26  ;;  %s2535_s10 = smov 106   ;;  %s2536_s14 = smov 104   ;;  %vm510_vm5 = vcmask 875520   ;;  %vm369_vm6 = vcmask 867328   ;;  %vm381_vm7 = vcmask 859136   ;;  %vm393_vm8 = vcmask 850944  }
  0x5f   : > { %s2537_s27 = smov 105   ;;  %s2538_s8 = smov 102   ;;  %vm405_vm9 = vcmask 842752   ;;  %vm417_vm10 = vcmask 834560   ;;  %vm537_vm11 = vcmask 703488   ;;  %vm549_vm12 = vcmask 695296  }
  0x60   : > { %s2539_s7 = smov 103   ;;  %s2540_s11 = smov 86   ;;  %vm456_vm13 = vcmask 687104   ;;  %vm471_vm14 = vcmask 678912   ;;  %vm345_vm15 = vcmask 1006592  }
  0x61   : > { %s2541_s16 = smov 85   ;;  %p280_p2 = scmp.lt.s32.totalorder %s2517_s21, 1 }
  0x62   : > { %1873 = vrot.lane.b32.xlu1 %v2765_v3, %s2531_s30  ;;  %1863 = vrot.lane.b32.xlu0 %v1862_v5, %s2530_s26  ;;  %s2543_s26 = smov 83  }
  0x66   : > { %1883 = vrot.lane.b32.xlu1 %v1862_v5, %s2531_s30  ;;  %1878 = vrot.lane.b32.xlu0 %v1862_v5, %s2529_s28  ;;  %s2542_s28 = smov 84   ;;  %s2544_s30 = smov 123  }
  0x6a   : > { %1893 = vrot.lane.b32.xlu1 %v1862_v5, %s2532_s24  ;;  %1888 = vrot.lane.b32.xlu0 %v2765_v3, %s2532_s24  ;;  %s2545_s24 = smov 110  }
  0x6e   : > { %1903 = vrot.lane.b32.xlu1 %v1862_v5, %s2533_s25  ;;  %1898 = vrot.lane.b32.xlu0 %v2765_v3, %s2533_s25  ;;  %s2546_s25 = smov 122  }
  0x72   : > { %1913 = vrot.lane.b32.xlu1 %v2765_v3, %s2534_s6  ;;  %1908 = vrot.lane.b32.xlu0 %v2765_v3, %s2535_s10 }
  0x76   : > { %1923 = vrot.lane.b32.xlu1 %v1862_v5, %s2535_s10  ;;  %1918 = vrot.lane.b32.xlu0 %v1862_v5, %s2534_s6  ;;  %s2547_s6 = smov 109   ;;  %s2548_s10 = smov 100  }
  0x7a   : > { %1933 = vrot.lane.b32.xlu1 %v2765_v3, %s2536_s14  ;;  %1928 = vrot.lane.b32.xlu0 %v2765_v3, %s2537_s27 }
  0x7e   : > { %1943 = vrot.lane.b32.xlu1 %v1862_v5, %s2536_s14  ;;  %1938 = vrot.lane.b32.xlu0 %v1862_v5, %s2537_s27  ;;  %s2549_s14 = smov 101   ;;  %s2550_s27 = smov 88  }
  0x82   : > { %1953 = vrot.lane.b32.xlu1 %v2765_v3, %s2538_s8  ;;  %1948 = vrot.lane.b32.xlu0 %v2765_v3, %s2539_s7 }
  0x86   : > { %1963 = vrot.lane.b32.xlu1 %v1862_v5, %s2538_s8  ;;  %1958 = vrot.lane.b32.xlu0 %v1862_v5, %s2539_s7  ;;  %s2551_s8 = smov 87   ;;  %s2552_s7 = smov 82  }
  0x8a   : > { %1973 = vrot.lane.b32.xlu1 %v1862_v5, %s2540_s11  ;;  %1968 = vrot.lane.b32.xlu0 %v2765_v3, %s2540_s11  ;;  %s2553_s11 = smov 36  }
  0x8e   : > { %1983 = vrot.lane.b32.xlu1 %v1862_v5, %s2541_s16  ;;  %1978 = vrot.lane.b32.xlu0 %v2765_v3, %s2541_s16  ;;  %s2554_s16 = smov 118  }
  0x92   : > { %1993 = vrot.lane.b32.xlu1 %v1862_v5, %s2542_s28  ;;  %1988 = vrot.lane.b32.xlu0 %v2765_v3, %s2542_s28  ;;  %s281_s28 = scalar_select %p280_p2, %s2517_s21, 1 }
  0x96   : > { %2003 = vrot.lane.b32.xlu1 %v1862_v5, %s2543_s26  ;;  %1998 = vrot.lane.b32.xlu0 %v2765_v3, %s2543_s26  ;;  %s1555_s26 = sshll.u32 %s281_s28, 3 }
  0x9a   : > { %339 = vrot.lane.b32.xlu1 %v2761_v2, %s2544_s30  ;;  %2008 = vrot.lane.b32.xlu0 %v2765_v3, %s2544_s30  ;;  %s1405_s30 = scalar_lea.sflag [#allocation4], %s2740_s12 }
  0x9e   : > { %2018 = vrot.lane.b32.xlu1 %v1862_v5, %s2545_s24  ;;  %2013 = vrot.lane.b32.xlu0 %v2765_v3, %s2545_s24 }
  0xa2   : > { %351 = vrot.lane.b32.xlu1 %v2761_v2, %s2546_s25  ;;  %2023 = vrot.lane.b32.xlu0 %v2765_v3, %s2546_s25  ;;  %s3259_s25 = scalar_lea.vmem %s3493_s5, %s1555_s26 }
  0xa6   : > { %2033 = vrot.lane.b32.xlu1 %v1862_v5, %s2547_s6  ;;  %2028 = vrot.lane.b32.xlu0 %v2765_v3, %s2547_s6  ;;  %s2558_s6 = smov [#allocation7]  }
  0xaa   : > { %2043 = vrot.lane.b32.xlu1 %v2765_v3, %s2548_s10  ;;  %2038 = vrot.lane.b32.xlu0 %v2765_v3, %s2549_s14 }
  0xae   : > { %435 = vrot.lane.b32.xlu1 %v2761_v2, %s2548_s10  ;;  %423 = vrot.lane.b32.xlu0 %v2761_v2, %s2549_s14  ;;  %s2443_s10 = sshll.u32 %s2558_s6, 4  ;;  %s2444_s10 = int_to_ptr.vmem [resolvable:$false] %s2443_s10 }
  0xb2   : > { %2048 = vrot.lane.b32.xlu0 %v2765_v3, %s2550_s27  ;;  %581 = vrot.lane.b32.xlu1 %v2768_v4, %s2550_s27 }
  0xb6   : > { %2053 = vrot.lane.b32.xlu0 %v2765_v3, %s2551_s8  ;;  %590 = vrot.lane.b32.xlu1 %v2768_v4, %s2551_s8 }
  0xba   : > { %2058 = vrot.lane.b32.xlu0 %v2765_v3, %s2552_s7 }
  0xd0   : > { %v1869_v6 = vpop.permute.xlu1 %1868  ;;  %v1859_v7 = vpop.permute.xlu0 %1858 }
  0xd1   : > { %v2803_v8 = vunpack.i.h.bf16 %v1859_v7  ;;  %v1860_v9 = vunpack.i.l.bf16 %v1859_v7  ;;  %v2805_v10 = vunpack.i.h.bf16 %v1869_v6  ;;  %v1870_v11 = vunpack.i.l.bf16 %v1869_v6 }
  0xd3   : > { %3519 = vst [vmem:[#allocation11_spill] sm:$0xff] %v2805_v10  ;;  %v2809_v12 = vsel %vm297_vm0, %v1860_v9, %v2803_v8  ;;  %v311_v22 = vsel %vm309_vm1, %v1870_v11, %v2805_v10 }
  0xd4   : > { %v1874_v13 = vpop.permute.xlu1 %1873  ;;  %v2811_v14 = vpop.permute.xlu0 %1863  ;;  %v1597_v15 = vpack.c.bf16 %v2809_v12, %v2755_v0 }
  0xd5   : > { %v2815_v16 = vunpack.i.h.bf16 %v1874_v13  ;;  %v1875_v17 = vunpack.i.l.bf16 %v1874_v13  ;;  %v1866_v18 = vunpack.i.h.bf16 %v2811_v14  ;;  %v1865_v19 = vunpack.i.l.bf16 %v2811_v14 }
  0xd6   : > { %1598 = vmatprep.subr.bf16.mxu0 %v1597_v15 }
  0xd7   : > { %v2822_v20 = vpack.i.bf16 %v1865_v19, %v2768_v4  ;;  %v298_v21 = vsel %vm297_vm0, %v1866_v18, %v1860_v9  ;;  %v2829_v23 = vsel %vm321_vm2, %v1875_v17, %v2815_v16 }
  0xd8   : > { %v2831_v24 = vpop.permute.xlu1 %1883  ;;  %v1879_v25 = vpop.permute.xlu0 %1878  ;;  %v2834_v26 = vpack.i.bf16 %v298_v21, %v2761_v2  ;;  %v1599_v27 = vpack.c.bf16 %v298_v21, %v2761_v2  ;;  %v1601_v28 = vpack.c.bf16 %v2829_v23, %v311_v22 }
  0xd9   : > { %v1886_v29 = vunpack.i.h.bf16 %v2831_v24  ;;  %v1885_v30 = vunpack.i.l.bf16 %v2831_v24  ;;  %v1881_v31 = vunpack.i.h.bf16 %v1879_v25  ;;  %v2840_v32 = vunpack.i.l.bf16 %v1879_v25  ;;  %2063 = vrot.lane.b32.xlu1 %v2822_v20, %s2552_s7 }
  0xda   : > { %2088 = vrot.lane.b32.xlu0 %v2834_v26, %s2552_s7  ;;  %1600 = vmatpush1.bf16.msra.mxu0 %v1599_v27  ;;  %v480_v27 = vsel %vm297_vm0, %v2803_v8, %v1865_v19  ;;  %vm357_vm0 = vcmask 998400  }
  0xdb   : > { %1602 = vmatprep.subr.bf16.mxu0 %v1601_v28  ;;  %v2067_v33 = vpack.i.bf16 %v1885_v30, %v2840_v32  ;;  %v483_v34 = vsel %vm309_vm1, %v2805_v10, %v2840_v32  ;;  %v2853_v35 = vsel %vm309_vm1, %v1881_v31, %v1870_v11  ;;  %v322_v36 = vsel %vm321_vm2, %v1886_v29, %v1875_v17 }
  0xdc   : > { %v1894_v37 = vpop.permute.xlu1 %1893  ;;  %v1889_v38 = vpop.permute.xlu0 %1888  ;;  %v2856_v39 = vpack.i.bf16 %v483_v34, %v311_v22  ;;  %v1603_v40 = vpack.c.bf16 %v322_v36, %v2853_v35  ;;  %v2102_v47 = vpack.i.bf16 %v322_v36, %v2853_v35  ;;  %v2928_v14 = vpack.i.bf16 %v480_v27, %v2809_v12 }
  0xdd   : > { %v1895_v41 = vunpack.i.l.bf16 %v1894_v37  ;;  %v2859_v42 = vunpack.i.h.bf16 %v1889_v38  ;;  %v1890_v43 = vunpack.i.l.bf16 %v1889_v38  ;;  %2068 = vrot.lane.b32.xlu1 %v2067_v33, %s2552_s7  ;;  %v1896_v53 = vunpack.i.h.bf16 %v1894_v37 }
  0xde   : > { %2093 = vrot.lane.b32.xlu0 %v2856_v39, %s2552_s7  ;;  %1604 = vmatpush1.bf16.msra.mxu0 %v1603_v40  ;;  %v486_v19 = vsel %vm321_vm2, %v2815_v16, %v1885_v30  ;;  %vm561_vm1 = vcmask 900096   ;;  %vm441_vm2 = vcmask 818176  }
  0xdf   : > { %v2871_v48 = vsel %vm333_vm3, %v1890_v43, %v2859_v42  ;;  %v489_v52 = vsel %vm333_vm3, %v2859_v42, %v1895_v41  ;;  %v2891_v61 = vsel %vm333_vm3, %v1896_v53, %v1890_v43  ;;  %v2097_v24 = vpack.i.bf16 %v486_v19, %v2829_v23 }
  0xe0   : > { %v1904_v45 = vpop.permute.xlu1 %1903  ;;  %v2866_v46 = vpop.permute.xlu0 %1898  ;;  %v2107_v57 = vpack.i.bf16 %v489_v52, %v2871_v48  ;;  %vm429_vm3 = vcmask 826368  }
  0xe1   : > { %v1906_v49 = vunpack.i.h.bf16 %v1904_v45  ;;  %v2873_v50 = vunpack.i.l.bf16 %v1904_v45  ;;  %v1900_v51 = vunpack.i.l.bf16 %v2866_v46  ;;  %v1901_v37 = vunpack.i.h.bf16 %v2866_v46 }
  0xe2   : > { %2103 = vrot.lane.b32.xlu0 %v2102_v47, %s2552_s7 }
  0xe3   : > { %v2072_v54 = vpack.i.bf16 %v2873_v50, %v1895_v41  ;;  %v2887_v58 = vsel %vm498_vm4, %v1906_v49, %v1900_v51 }
  0xe4   : > { %v1914_v55 = vpop.permute.xlu1 %1913  ;;  %v2880_v56 = vpop.permute.xlu0 %1908  ;;  %v2117_v4 = vpack.i.bf16 %v2887_v58, %v2891_v61 }
  0xe5   : > { %2073 = vrot.lane.b32.xlu1 %v2072_v54, %s2552_s7  ;;  %v1916_v59 = vunpack.i.h.bf16 %v1914_v55  ;;  %v1915_v60 = vunpack.i.l.bf16 %v1914_v55  ;;  %v1910_v62 = vunpack.i.l.bf16 %v2880_v56  ;;  %v2957_v54 = vunpack.i.h.bf16 %v2880_v56 }
  0xe6   : > { %2108 = vrot.lane.b32.xlu0 %v2107_v57, %s2552_s7 }
  0xe7   : > { %v512_v11 = vsel %vm510_vm5, %v1915_v60, %v1916_v59 }
  0xe8   : > { %v2894_v63 = vpop.permute.xlu1 %1923  ;;  %v1919_v2 = vpop.permute.xlu0 %1918 }
  0xe9   : > { %v1926_v5 = vunpack.i.h.bf16 %v2894_v63  ;;  %v1925_v6 = vunpack.i.l.bf16 %v2894_v63  ;;  %v1921_v7 = vunpack.i.h.bf16 %v1919_v2  ;;  %v1920_v9 = vunpack.i.l.bf16 %v1919_v2 }
  0xea   : > { %2118 = vrot.lane.b32.xlu0 %v2117_v4, %s2552_s7  ;;  %v3018_v63 = vsel %vm369_vm6, %v1910_v62, %v2957_v54 }
  0xeb   : > { %v2903_v13 = vpack.i.bf16 %v1925_v6, %v1920_v9  ;;  %v513_v15 = vsel %vm510_vm5, %v1916_v59, %v1920_v9  ;;  %v2908_v17 = vsel %vm369_vm6, %v1926_v5, %v1910_v62  ;;  %v511_v18 = vsel %vm510_vm5, %v1921_v7, %v1915_v60 }
  0xec   : > { %v1934_v21 = vpop.permute.xlu1 %1933  ;;  %v1929_v22 = vpop.permute.xlu0 %1928  ;;  %v2910_v25 = vpack.i.bf16 %v513_v15, %v512_v11  ;;  %v2925_v33 = vpack.i.bf16 %v2908_v17, %v511_v18  ;;  %v500_v59 = vsel %vm498_vm4, %v1900_v51, %v1901_v37  ;;  %v501_v60 = vsel %vm498_vm4, %v1901_v37, %v2873_v50 }
  0xed   : > { %v2916_v28 = vunpack.i.h.bf16 %v1934_v21  ;;  %v2918_v29 = vunpack.i.h.bf16 %v1929_v22  ;;  %v1930_v31 = vunpack.i.l.bf16 %v1929_v22  ;;  %2078 = vrot.lane.b32.xlu1 %v2903_v13, %s2552_s7  ;;  %v1935_v34 = vunpack.i.l.bf16 %v1934_v21 }
  0xee   : > { %2123 = vrot.lane.b32.xlu0 %v2910_v25, %s2552_s7  ;;  %v2989_v11 = vpack.i.bf16 %v501_v60, %v500_v59  ;;  %v516_v27 = vsel %vm369_vm6, %v2957_v54, %v1925_v6  ;;  %vm573_vm4 = vcmask 891904   ;;  %vm583_vm5 = vcmask 719872  }
  0xef   : > { %3520 = vst [vmem:[#allocation12_spill] sm:$0xff] %v2916_v28  ;;  %3521 = vst [vmem:[#allocation13_spill] sm:$0xff] %v2918_v29  ;;  %v2939_v41 = vsel %vm381_vm7, %v1930_v31, %v2918_v29  ;;  %v2977_v7 = vsel %vm393_vm8, %v1935_v34, %v2916_v28  ;;  %v3021_v6 = vpack.i.bf16 %v516_v27, %v3018_v63  ;;  %vm592_vm6 = vcmask 711680  }
  0xf0   : > { %v1944_v38 = vpop.permute.xlu1 %1943  ;;  %v1939_v40 = vpop.permute.xlu0 %1938 }
  0xf1   : > { %v1946_v43 = vunpack.i.h.bf16 %v1944_v38  ;;  %v1945_v12 = vunpack.i.l.bf16 %v1944_v38  ;;  %v1941_v45 = vunpack.i.h.bf16 %v1939_v40  ;;  %v1940_v47 = vunpack.i.l.bf16 %v1939_v40  ;;  %2083 = vrot.lane.b32.xlu1 %v2928_v14, %s2552_s7 }
  0xf2   : > { %2133 = vrot.lane.b32.xlu0 %v2925_v33, %s2552_s7 }
  0xf3   : > { %v519_v30 = vsel %vm381_vm7, %v2918_v29, %v1940_v47  ;;  %v2949_v49 = vsel %vm381_vm7, %v1941_v45, %v1930_v31  ;;  %v2952_v52 = vsel %vm393_vm8, %v1946_v43, %v1935_v34  ;;  %v522_v53 = vsel %vm393_vm8, %v2916_v28, %v1945_v12 }
  0xf4   : > { %v2959_v55 = vpop.permute.xlu1 %1953  ;;  %v1949_v57 = vpop.permute.xlu0 %1948  ;;  %v2962_v23 = vpack.i.bf16 %v519_v30, %v2939_v41  ;;  %v2983_v46 = vpack.i.bf16 %v2952_v52, %v2949_v49  ;;  %v2986_v51 = vpack.i.bf16 %v522_v53, %v2977_v7  ;;  %v2991_v15 = vpack.i.bf16 %v1945_v12, %v1940_v47 }
  0xf5   : > { %v2970_v2 = vunpack.i.h.bf16 %v2959_v55  ;;  %v2972_v4 = vunpack.i.h.bf16 %v1949_v57  ;;  %v1950_v5 = vunpack.i.l.bf16 %v1949_v57  ;;  %2098 = vrot.lane.b32.xlu1 %v2097_v24, %s2552_s7  ;;  %v1955_v9 = vunpack.i.l.bf16 %v2959_v55 }
  0xf6   : > { %2138 = vrot.lane.b32.xlu0 %v2962_v23, %s2552_s7  ;;  %vm1394_vm7 = vcmask 15360   ;;  %vm723_vm8 = vcmask 670720  }
  0xf7   : > { %3522 = vst [vmem:[#allocation14_spill] sm:$0xff] %v2970_v2  ;;  %3523 = vst [vmem:[#allocation15_spill] sm:$0xff] %v2972_v4  ;;  %v3010_v37 = vsel %vm405_vm9, %v1950_v5, %v2972_v4 }
  0xf8   : > { %v2995_v21 = vpop.permute.xlu1 %1963  ;;  %v2997_v22 = vpop.permute.xlu0 %1958 }
  0xf9   : > { %v1966_v31 = vunpack.i.h.bf16 %v2995_v21  ;;  %v1961_v34 = vunpack.i.h.bf16 %v2997_v22  ;;  %v3498_v19 = vunpack.i.l.bf16 %v2997_v22  ;;  %2113 = vrot.lane.b32.xlu1 %v2989_v11, %s2552_s7  ;;  %v1965_v59 = vunpack.i.l.bf16 %v2995_v21 }
  0xfa   : > { %2148 = vrot.lane.b32.xlu0 %v2983_v46, %s2552_s7 }
  0xfb   : > { %v525_v38 = vsel %vm405_vm9, %v2972_v4, %v3498_v19  ;;  %v3028_v40 = vsel %vm405_vm9, %v1961_v34, %v1950_v5  ;;  %v3031_v43 = vsel %vm417_vm10, %v1966_v31, %v1955_v9  ;;  %vm948_vm9 = vcmask 293888  }
  0xfc   : > { %v1974_v12 = vpop.permute.xlu1 %1973  ;;  %v1969_v45 = vpop.permute.xlu0 %1968  ;;  %v2157_v56 = vpack.i.bf16 %v525_v38, %v3010_v37  ;;  %v2167_v53 = vpack.i.bf16 %v3031_v43, %v3028_v40 }
  0xfd   : > { %v1975_v62 = vunpack.i.l.bf16 %v1974_v12  ;;  %v1971_v47 = vunpack.i.h.bf16 %v1969_v45  ;;  %v3034_v24 = vunpack.i.l.bf16 %v1969_v45  ;;  %2128 = vrot.lane.b32.xlu1 %v3021_v6, %s2552_s7  ;;  %v1976_v30 = vunpack.i.h.bf16 %v1974_v12 }
  0xfe   : > { %2158 = vrot.lane.b32.xlu0 %v2157_v56, %s2552_s7 }
  0xff   : > { %v539_v55 = vsel %vm537_vm11, %v3034_v24, %v1971_v47  ;;  %v540_v57 = vsel %vm537_vm11, %v1971_v47, %v1975_v62  ;;  %v538_v45 = vsel %vm537_vm11, %v1976_v30, %v3034_v24  ;;  %vm1051_vm11 = vcmask 965632  }
 0x100   : > { %v1984_v60 = vpop.permute.xlu1 %1983  ;;  %v1979_v5 = vpop.permute.xlu0 %1978  ;;  %v3045_v27 = vpack.i.bf16 %v540_v57, %v539_v55 }
 0x101   : > { %v1986_v31 = vunpack.i.h.bf16 %v1984_v60  ;;  %v1985_v34 = vunpack.i.l.bf16 %v1984_v60  ;;  %v1981_v38 = vunpack.i.h.bf16 %v1979_v5  ;;  %v3047_v12 = vunpack.i.l.bf16 %v1979_v5  ;;  %2143 = vrot.lane.b32.xlu1 %v2986_v51, %s2552_s7 }
 0x102   : > { %2168 = vrot.lane.b32.xlu0 %v2167_v53, %s2552_s7  ;;  %v528_v5 = vsel %vm417_vm10, %v2970_v2, %v1965_v59 }
 0x103   : > { %v3054_v56 = vpack.i.bf16 %v1985_v34, %v1975_v62  ;;  %v550_v47 = vsel %vm549_vm12, %v1986_v31, %v3047_v12  ;;  %v551_v55 = vsel %vm549_vm12, %v3047_v12, %v1981_v38  ;;  %v552_v53 = vsel %vm549_vm12, %v1981_v38, %v1985_v34 }
 0x104   : > { %v1994_v57 = vpop.permute.xlu1 %1993  ;;  %v1989_v60 = vpop.permute.xlu0 %1988  ;;  %v3073_v31 = vsel %vm417_vm10, %v1955_v9, %v2970_v2  ;;  %v2187_v36 = vpack.i.bf16 %v550_v47, %v538_v45  ;;  %v3075_v44 = vpack.i.bf16 %v552_v53, %v551_v55  ;;  %vm1067_vm10 = vcmask 64512  }
 0x105   : > { %v1995_v30 = vunpack.i.l.bf16 %v1994_v57  ;;  %v1991_v62 = vunpack.i.h.bf16 %v1989_v60  ;;  %v3065_v18 = vunpack.i.l.bf16 %v1989_v60  ;;  %2153 = vrot.lane.b32.xlu1 %v2991_v15, %s2552_s7  ;;  %v1996_v21 = vunpack.i.h.bf16 %v1994_v57 }
 0x106   : > { %2178 = vrot.lane.b32.xlu0 %v3045_v27, %s2552_s7  ;;  %v2162_v34 = vpack.i.bf16 %v528_v5, %v3073_v31  ;;  %v3525_v5 = vunpack.i.l.bf16 %v2997_v22  ;;  %vm1355_vm12 = vcmask 785408  }
 0x107   : > { %v3080_v38 = vsel %vm456_vm13, %v3065_v18, %v1991_v62  ;;  %v3083_v60 = vsel %vm456_vm13, %v1991_v62, %v1995_v30  ;;  %v3101_v29 = vsel %vm456_vm13, %v1996_v21, %v3065_v18 }
 0x108   : > { %3524 = vst [vmem:[#allocation16_spill] sm:$0xff] %v3083_v60  ;;  %v2004_v19 = vpop.permute.xlu1 %2003  ;;  %v1999_v4 = vpop.permute.xlu0 %1998  ;;  %v3087_v9 = vpack.i.bf16 %v3083_v60, %v3080_v38  ;;  %v2172_v53 = vpack.i.bf16 %v1965_v59, %v3525_v5 }
 0x109   : > { %v2006_v45 = vunpack.i.h.bf16 %v2004_v19  ;;  %v2005_v47 = vunpack.i.l.bf16 %v2004_v19  ;;  %v2001_v55 = vunpack.i.h.bf16 %v1999_v4  ;;  %v3089_v57 = vunpack.i.l.bf16 %v1999_v4  ;;  %2163 = vrot.lane.b32.xlu1 %v2162_v34, %s2552_s7 }
 0x10a   : > { %2188 = vrot.lane.b32.xlu0 %v2187_v36, %s2552_s7 }
 0x10b   : > { %v3095_v62 = vpack.i.bf16 %v2005_v47, %v1995_v30  ;;  %v3105_v4 = vsel %vm471_vm14, %v2006_v45, %v3089_v57  ;;  %v3108_v22 = vsel %vm471_vm14, %v2001_v55, %v2005_v47  ;;  %v3113_v30 = vsel %vm471_vm14, %v3089_v57, %v2001_v55 }
 0x10c   : > { %v340_v19 = vpop.permute.xlu1 %339  ;;  %v2009_v34 = vpop.permute.xlu0 %2008  ;;  %v2207_v21 = vpack.i.bf16 %v3105_v4, %v3101_v29  ;;  %v3121_v45 = vpack.i.bf16 %v3108_v22, %v3113_v30 }
 0x10d   : > { %v2011_v36 = vunpack.i.h.bf16 %v2009_v34  ;;  %v2010_v59 = vunpack.i.l.bf16 %v2009_v34  ;;  %2173 = vrot.lane.b32.xlu1 %v2172_v53, %s2552_s7 }
 0x10e   : > { %2198 = vrot.lane.b32.xlu0 %v3087_v9, %s2552_s7 }
 0x10f   : > { %v3126_v5 = vpack.c.bf16 %v2011_v36, %v2859_v42  ;;  %v347_v53 = vsel %vm345_vm15, %v2010_v59, %v2011_v36  ;;  %v346_v34 = vsel %vm345_vm15, %v340_v19, %v2010_v59 }
 0x110   : > { %v3128_v55 = vpop.permute.xlu1 %2018  ;;  %v3130_v2 = vpop.permute.xlu0 %2013  ;;  %v1605_v28 = vpack.c.bf16 %v347_v53, %v2871_v48  ;;  %v1607_v10 = vpack.c.bf16 %v346_v34, %v2891_v61 }
 0x111   : > { %2183 = vrot.lane.b32.xlu1 %v3075_v44, %s2552_s7 }
 0x112   : > { %2208 = vrot.lane.b32.xlu0 %v2207_v21, %s2552_s7  ;;  %1606 = vmatprep.subr.bf16.mxu0 %v1605_v28  ;;  %v2021_v28 = vunpack.i.h.bf16 %v3128_v55 }
 0x113   : > { %1608 = vmatpush1.bf16.msra.mxu0 %v1607_v10  ;;  %v2015_v10 = vunpack.i.l.bf16 %v3130_v2 }
 0x114   : > { %v352_v47 = vpop.permute.xlu1 %351  ;;  %v2024_v42 = vpop.permute.xlu0 %2023 }
 0x115   : > { %v2026_v36 = vunpack.i.h.bf16 %v2024_v42  ;;  %v2025_v19 = vunpack.i.l.bf16 %v2024_v42  ;;  %2193 = vrot.lane.b32.xlu1 %v3054_v56, %s2552_s7 }
 0x116   : > { %2218 = vrot.lane.b32.xlu0 %v2765_v3, %s2553_s11 }
 0x117   : > { %v3142_v48 = vpack.c.bf16 %v2957_v54, %v2026_v36  ;;  %v359_v61 = vsel %vm357_vm0, %v2025_v19, %v2026_v36  ;;  %v358_v59 = vsel %vm357_vm0, %v352_v47, %v2025_v19  ;;  %v1613_v54 = vpack.c.bf16 %v2977_v7, %v2939_v41  ;;  %v1058_v47 = vld [vmem:[#allocation5 + $0x8] sm:$0xff] }
 0x118   : > { %v3146_v21 = vpop.permute.xlu1 %2033  ;;  %v2029_v53 = vpop.permute.xlu0 %2028  ;;  %v1609_v34 = vpack.c.bf16 %v3018_v63, %v359_v61  ;;  %v1611_v42 = vpack.c.bf16 %v2908_v17, %v358_v59  ;;  %v1615_v61 = vpack.c.bf16 %v2952_v52, %v2949_v49  ;;  %1135 = vmatprep.mubr.f32.mxu0 %v1058_v47  ;;  %1277 = vmatprep.mubr.f32.mxu1 %v1058_v47 }
 0x119   : > { %2203 = vrot.lane.b32.xlu1 %v3121_v45, %s2552_s7  ;;  %v2031_v3 = vunpack.i.h.bf16 %v2029_v53  ;;  %v2035_v63 = vunpack.i.l.bf16 %v3146_v21  ;;  %v2030_v17 = vunpack.i.l.bf16 %v2029_v53  ;;  %v1617_v53 = vpack.c.bf16 %v3073_v31, %v3010_v37 }
 0x11a   : > { %2228 = vrot.lane.b32.xlu0 %v2834_v26, %s2553_s11  ;;  %1610 = vmatprep.subr.bf16.mxu0 %v1609_v34  ;;  %v562_v26 = vsel %vm561_vm1, %v2021_v28, %v2015_v10  ;;  %v2036_v37 = vunpack.i.h.bf16 %v3146_v21 }
 0x11b   : > { %1612 = vmatpush1.bf16.msra.mxu0 %v1611_v42  ;;  %v575_v42 = vsel %vm573_vm4, %v2030_v17, %v2031_v3  ;;  %v576_v52 = vsel %vm573_vm4, %v2031_v3, %v2035_v63  ;;  %v2247_v47 = vpack.i.bf16 %v562_v26, %v2853_v35 }
 0x11c   : > { %1614 = vmatprep.subr.bf16.mxu0 %v1613_v54  ;;  %v2044_v36 = vpop.permute.xlu1 %2043  ;;  %v2039_v19 = vpop.permute.xlu0 %2038  ;;  %v2257_v35 = vpack.i.bf16 %v576_v52, %v575_v42 }
 0x11d   : > { %2213 = vrot.lane.b32.xlu1 %v3095_v62, %s2552_s7  ;;  %v2046_v41 = vunpack.i.h.bf16 %v2044_v36  ;;  %v2045_v7 = vunpack.i.l.bf16 %v2044_v36  ;;  %v2041_v59 = vunpack.i.h.bf16 %v2039_v19  ;;  %v2040_v34 = vunpack.i.l.bf16 %v2039_v19  ;;  %s1754_s7 = smul.u32 384, %s2517_s21 }
 0x11e   : > { %2238 = vrot.lane.b32.xlu0 %v2856_v39, %s2553_s11  ;;  %v2016_v36 = vunpack.i.h.bf16 %v3130_v2  ;;  %v2020_v2 = vunpack.i.l.bf16 %v3128_v55 }
 0x11f   : > { %v3167_v49 = vpack.c.bf16 %v2046_v41, %v2041_v59  ;;  %1616 = vmatpush1.bf16.msra.mxu0 %v1615_v61  ;;  %v431_v28 = vsel %vm429_vm3, %v2040_v34, %v2041_v59  ;;  %v443_v54 = vsel %vm441_vm2, %v2045_v7, %v2046_v41  ;;  %v1619_v61 = vpack.c.bf16 %v3031_v43, %v3028_v40  ;;  %s3441_s26 = scalar_lea.hbm %s3492_s4, %s1754_s7 }
 0x120   : > { %1618 = vmatprep.subr.bf16.mxu0 %v1617_v53  ;;  %v436_v39 = vpop.permute.xlu1 %435  ;;  %v424_v19 = vpop.permute.xlu0 %423  ;;  %v1621_v60 = vpack.c.bf16 %v443_v54, %v431_v28  ;;  %v563_v21 = vsel %vm561_vm1, %v2015_v10, %v2016_v36  ;;  %v564_v41 = vsel %vm561_vm1, %v2016_v36, %v2020_v2  ;;  %v1625_v40 = vpack.c.bf16 %v3113_v30, %v3080_v38  ;;  %v2379_v28 = vld [vmem:[%s2744_s17 + $0x18] sm:$0xff]  ;;  %v2380_v36 = vld [vmem:[%s2744_s17 + $0x10] sm:$0xff]  ;;  %s1753_s17 = smul.u32 24, %s2740_s12 }
 0x121   : > { %2223 = vrot.lane.b32.xlu1 %v2928_v14, %s2553_s11  ;;  %v442_v31 = vsel %vm441_vm2, %v436_v39, %v2045_v7  ;;  %v430_v3 = vsel %vm429_vm3, %v424_v19, %v2040_v34  ;;  %v574_v14 = vsel %vm573_vm4, %v2036_v37, %v2030_v17  ;;  %v2242_v43 = vpack.i.bf16 %v564_v41, %v563_v21 }
 0x122   : > { %2248 = vrot.lane.b32.xlu0 %v2247_v47, %s2553_s11  ;;  %v1623_v26 = vpack.c.bf16 %v442_v31, %v430_v3  ;;  %v2267_v55 = vpack.i.bf16 %v2887_v58, %v574_v14  ;;  %v2272_v58 = vpack.i.bf16 %v2873_v50, %v2035_v63  ;;  %v3527_v34 = vpack.i.bf16 %v3089_v57, %v3065_v18  ;;  %s271_s8 = scalar_lea.vmem [#allocation7], %s1753_s17  ;;  %s2445_s17 = scalar_lea.vmem %s2444_s10, 768 }
 0x123   : > { %1620 = vmatpush1.bf16.msra.mxu0 %v1619_v61  ;;  %v2555_v18 = vmov 0   ;;  %v1695_v47 = vpack.c.bf16 %v2803_v8, %v2380_v36 }
 0x124   : > { %1622 = vmatprep.subr.bf16.mxu0 %v1621_v60  ;;  %v1627_v60 = vpack.c.bf16 %v3105_v4, %v3101_v29  ;;  %v2049_v38 = vpop.permute.xlu0 %2048  ;;  %v582_v30 = vpop.permute.xlu1 %581  ;;  %2377 = vset.pattern.permute.xlu1 %v2555_v18 }
 0x125   : > { %2233 = vrot.lane.b32.xlu1 %v2822_v20, %s2553_s11  ;;  %v2252_v20 = vpack.i.bf16 %v2020_v2, %v2840_v32  ;;  %v2051_v29 = vunpack.i.h.bf16 %v2049_v38  ;;  %v2050_v4 = vunpack.i.l.bf16 %v2049_v38  ;;  %2378 = vset.pattern.permute.xlu0 %v2555_v18 }
 0x126   : > { %2258 = vrot.lane.b32.xlu0 %v2257_v35, %s2553_s11 }
 0x127   : > { %1624 = vmatpush1.bf16.msra.mxu0 %v1623_v26  ;;  %v584_v32 = vsel %vm583_vm5, %v2050_v4, %v2051_v29 }
 0x128   : > { %1626 = vmatprep.subr.bf16.mxu0 %v1625_v40  ;;  %v2054_v10 = vpop.permute.xlu0 %2053 }
 0x129   : > { %2243 = vrot.lane.b32.xlu1 %v2242_v43, %s2553_s11  ;;  %v2055_v50 = vunpack.i.l.bf16 %v2054_v10 }
 0x12a   : > { %2268 = vrot.lane.b32.xlu0 %v2267_v55, %s2553_s11 }
 0x12b   : > { %1628 = vmatpush1.bf16.msra.mxu0 %v1627_v60  ;;  %v2327_v63 = vpack.i.bf16 %v2055_v50, %v2050_v4 }
 0x12d   : > { %2253 = vrot.lane.b32.xlu1 %v2252_v20, %s2553_s11 }
 0x12e   : > { %2278 = vrot.lane.b32.xlu0 %v2910_v25, %s2553_s11  ;;  %v585_v25 = vsel %vm583_vm5, %v2051_v29, %v582_v30 }
 0x131   : > { %2263 = vrot.lane.b32.xlu1 %v2989_v11, %s2553_s11  ;;  %v2317_v11 = vpack.i.bf16 %v585_v25, %v584_v32 }
 0x132   : > { %2288 = vrot.lane.b32.xlu0 %v2925_v33, %s2553_s11  ;;  %v2056_v33 = vunpack.i.h.bf16 %v2054_v10 }
 0x134   : > { %v593_v17 = vsel %vm592_vm6, %v2055_v50, %v2056_v33 }
 0x135   : > { %2273 = vrot.lane.b32.xlu1 %v2272_v58, %s2553_s11 }
 0x136   : > { %2298 = vrot.lane.b32.xlu0 %v2962_v23, %s2553_s11  ;;  %v591_v23 = vpop.permute.xlu1 %590 }
 0x137   : > { %v594_v7 = vsel %vm592_vm6, %v2056_v33, %v591_v23 }
 0x139   : > { %2283 = vrot.lane.b32.xlu1 %v3021_v6, %s2553_s11  ;;  %v2322_v6 = vpack.i.bf16 %v594_v7, %v593_v17 }
 0x13a   : > { %2308 = vrot.lane.b32.xlu0 %v2983_v46, %s2553_s11  ;;  %v3526_v46 = vpack.i.bf16 %v3047_v12, %v3034_v24 }
 0x13d   : > { %2293 = vrot.lane.b32.xlu1 %v2903_v13, %s2553_s11  ;;  %v2059_v13 = vpop.permute.xlu0 %2058 }
 0x13e   : > { %2318 = vrot.lane.b32.xlu0 %v2317_v11, %s2553_s11  ;;  %v2061_v57 = vunpack.i.h.bf16 %v2059_v13 }
 0x141   : > { %2303 = vrot.lane.b32.xlu1 %v2986_v51, %s2553_s11  ;;  %v2332_v51 = vpack.i.bf16 %v591_v23, %v582_v30 }
 0x142   : > { %2328 = vrot.lane.b32.xlu0 %v2327_v63, %s2553_s11 }
 0x145   : > { %2313 = vrot.lane.b32.xlu1 %v2991_v15, %s2553_s11 }
 0x146   : > { %2338 = vrot.lane.b32.xlu0 %v3045_v27, %s2553_s11 }
 0x149   : > { %2323 = vrot.lane.b32.xlu1 %v2322_v6, %s2553_s11 }
 0x14a   : > { %2348 = vrot.lane.b32.xlu0 %v3526_v46, %s2553_s11 }
 0x14b   : > { %v2064_v27 = vpop.permute.xlu1 %2063 }
 0x14c   : > { %v2089_v59 = vpop.permute.xlu0 %2088  ;;  %v2065_v53 = vunpack.i.l.bf16 %v2064_v27  ;;  %v2066_v39 = vunpack.i.h.bf16 %v2064_v27 }
 0x14d   : > { %2333 = vrot.lane.b32.xlu1 %v2332_v51, %s2553_s11  ;;  %v2090_v52 = vunpack.i.l.bf16 %v2089_v59  ;;  %v2091_v19 = vunpack.i.h.bf16 %v2089_v59 }
 0x14e   : > { %2358 = vrot.lane.b32.xlu0 %v3087_v9, %s2553_s11  ;;  %v726_v21 = vsel %vm723_vm8, %v2061_v57, %v2065_v53 }
 0x14f   : > { %v3243_v12 = vpop.permute.xlu1 %2068 }
 0x150   : > { %v3230_v15 = vpop.permute.xlu0 %2093  ;;  %v2070_v61 = vunpack.i.l.bf16 %v3243_v12  ;;  %v2071_v43 = vunpack.i.h.bf16 %v3243_v12 }
 0x151   : > { %2343 = vrot.lane.b32.xlu1 %v3075_v44, %s2553_s11  ;;  %v2096_v37 = vunpack.i.h.bf16 %v3230_v15  ;;  %v2095_v31 = vunpack.i.l.bf16 %v3230_v15 }
 0x152   : > { %2368 = vrot.lane.b32.xlu0 %v3527_v34, %s2553_s11 }
 0x153   : > { %v731_v30 = vsel %vm723_vm8, %v2095_v31, %v2096_v37  ;;  %v732_v50 = vsel %vm723_vm8, %v2096_v37, %v2070_v61 }
 0x154   : > { %v3238_v24 = vpop.permute.xlu0 %2103 }
 0x155   : > { %2353 = vrot.lane.b32.xlu1 %v3054_v56, %s2553_s11  ;;  %v2105_v8 = vunpack.i.l.bf16 %v3238_v24  ;;  %v2106_v32 = vunpack.i.h.bf16 %v3238_v24 }
 0x156   : > { %1047 = vrot.lane.b32.xlu0 %v2758_v1, %s2554_s16 }
 0x157   : > { %v3252_v44 = vpop.permute.xlu1 %2073  ;;  %v730_v23 = vsel %vm723_vm8, %v2105_v8, %v2095_v31 }
 0x158   : > { %v3246_v9 = vpop.permute.xlu0 %2108  ;;  %v2075_v33 = vunpack.i.l.bf16 %v3252_v44  ;;  %v2076_v7 = vunpack.i.h.bf16 %v3252_v44 }
 0x159   : > { %2363 = vrot.lane.b32.xlu1 %v3121_v45, %s2553_s11  ;;  %v2060_v45 = vunpack.i.l.bf16 %v2059_v13  ;;  %v2111_v41 = vunpack.i.h.bf16 %v3246_v9  ;;  %v2110_v14 = vunpack.i.l.bf16 %v3246_v9 }
 0x15a   : > { %1045 = vrot.lane.b32.xlu0 %v2755_v0, %s2554_s16  ;;  %v2556_v0 = vmov 0.0  }
 0x15b   : > { %1395 = vst.msk [vmem:[%s3259_s25] sm:$0xff] %vm1394_vm7, %v2556_v0  ;;  %v725_v54 = vsel %vm723_vm8, %v2060_v45, %v2061_v57  ;;  %v724_v40 = vsel %vm723_vm8, %v2090_v52, %v2060_v45  ;;  %v737_v17 = vsel %vm723_vm8, %v2110_v14, %v2111_v41  ;;  %v738_v53 = vsel %vm723_vm8, %v2111_v41, %v2075_v33  ;;  %v3528_v52 = vld [vmem:[#allocation11_spill] sm:$0xff] }
 0x15c   : > { %v3254_v1 = vpop.permute.xlu0 %2118 }
 0x15d   : > { %2373 = vrot.lane.b32.xlu1 %v3095_v62, %s2553_s11  ;;  %v1061_v62 = vld [vmem:[%s3490_s2] sm:$0xff]  ;;  %v2120_v63 = vunpack.i.l.bf16 %v3254_v1  ;;  %v2121_v51 = vunpack.i.h.bf16 %v3254_v1  ;;  %s1425_s11 = sshll.u32 %s271_s8, 4  ;;  %s1426_s11 = int_to_ptr.vmem [resolvable:$true] %s1425_s11 }
 0x15e   : > { %s2439_s24 = scalar_lea.vmem %s1426_s11, 384  ;;  %p2446_p12 = scmp.lt.s32.totalorder %s1426_s11, %s2444_s10 }
 0x15f   : > { %v3265_v56 = vpop.permute.xlu1 %2078  ;;  %v736_v1 = vsel %vm723_vm8, %v2120_v63, %v2110_v14  ;;  %p2440_p6 = scmp.ne.s32.totalorder %s1426_s11, %s2439_s24  ;;  %p2447_p0 = scmp.lt.s32.totalorder %s2445_s17, %s2439_s24 }
 0x160   : > { %v3267_v42 = vpop.permute.xlu0 %2123  ;;  %v2080_v57 = vunpack.i.l.bf16 %v3265_v56 }
 0x161   : > { %1049 = vrot.lane.b32.xlu1 %v2379_v28, %s2554_s16  ;;  %v2126_v24 = vunpack.i.h.bf16 %v3267_v42  ;;  %v2125_v12 = vunpack.i.l.bf16 %v3267_v42  ;;  %v3529_v28 = vpack.c.bf16 %v2815_v16, %v3528_v52  ;;  %p2441_p8 = pnand %p2440_p6, %p2690_p13  ;;  %p2448_p5 = por %p2447_p0, %p2446_p12 }
 0x163   : > { %v2084_v3 = vpop.permute.xlu1 %2083  ;;  %v743_v16 = vsel %vm723_vm8, %v2125_v12, %v2126_v24  ;;  %p2442_p9 = pneg %p2441_p8 }
 0x164   : > { %v2086_v2 = vunpack.i.h.bf16 %v2084_v3  ;;  %v2085_v35 = vunpack.i.l.bf16 %v2084_v3  ;;  %v3279_v26 = vpop.permute.xlu0 %2133 }
 0x165   : > { %1064 = vperm.xlu1 %2377, %v1061_v62   ;;  %v2135_v45 = vunpack.i.l.bf16 %v3279_v26  ;;  %v2136_v31 = vunpack.i.h.bf16 %v3279_v26  ;;  %p2449_p10 = pnand %p2448_p5, %p2442_p9 }
 0x166   : > { %v728_v55 = vsel %vm723_vm8, %v2085_v35, %v2086_v2  ;;  %v729_v60 = vsel %vm723_vm8, %v2086_v2, %v2066_v39  ;;  %v727_v20 = vsel %vm723_vm8, %v2091_v19, %v2085_v35 }
 0x167   : > { %v2099_v38 = vpop.permute.xlu1 %2098  ;;  %v1629_v58 = vpack.c.bf16 %v728_v55, %v725_v54  ;;  %v1693_v29 = vpack.c.bf16 %v729_v60, %v726_v21  ;;  %v1631_v4 = vpack.c.bf16 %v727_v20, %v724_v40  ;;  %v742_v8 = vsel %vm723_vm8, %v2135_v45, %v2125_v12  ;;  %v3531_v12 = vld [vmem:[#allocation13_spill] sm:$0xff] }
 0x168   : > { %v2101_v25 = vunpack.i.h.bf16 %v2099_v38  ;;  %v2100_v10 = vunpack.i.l.bf16 %v2099_v38  ;;  %v3292_v11 = vpop.permute.xlu0 %2138 }
 0x169   : > { %1630 = vmatprep.subr.bf16.mxu0 %v1629_v58  ;;  %1694 = vmatprep.subr.bf16.mxu1 %v1693_v29  ;;  %v2141_v35 = vunpack.i.h.bf16 %v3292_v11  ;;  %v2140_v21 = vunpack.i.l.bf16 %v3292_v11 }
 0x16a   : > { %1632 = vmatpush1.bf16.msra.mxu0 %v1631_v4  ;;  %1696 = vmatpush3.bf16.msra.mxu1 %v1695_v47  ;;  %v734_v6 = vsel %vm723_vm8, %v2100_v10, %v2101_v25  ;;  %v735_v13 = vsel %vm723_vm8, %v2101_v25, %v2071_v43  ;;  %v733_v46 = vsel %vm723_vm8, %v2106_v32, %v2100_v10  ;;  %v2081_v47 = vunpack.i.h.bf16 %v3265_v56 }
 0x16b   : > { %v2114_v59 = vpop.permute.xlu1 %2113  ;;  %v1633_v15 = vpack.c.bf16 %v734_v6, %v731_v30  ;;  %v1697_v27 = vpack.c.bf16 %v735_v13, %v732_v50  ;;  %v1635_v34 = vpack.c.bf16 %v733_v46, %v730_v23  ;;  %v744_v56 = vsel %vm723_vm8, %v2126_v24, %v2080_v57  ;;  %v3530_v24 = vld [vmem:[#allocation12_spill] sm:$0xff] }
 0x16c   : > { %v2116_v9 = vunpack.i.h.bf16 %v2114_v59  ;;  %v2115_v44 = vunpack.i.l.bf16 %v2114_v59  ;;  %v2149_v18 = vpop.permute.xlu0 %2148  ;;  %v749_v30 = vsel %vm723_vm8, %v2140_v21, %v2141_v35 }
 0x16d   : > { %1634 = vmatprep.subr.bf16.mxu0 %v1633_v15  ;;  %1698 = vmatprep.subr.bf16.mxu1 %v1697_v27  ;;  %v2150_v41 = vunpack.i.l.bf16 %v2149_v18  ;;  %v2151_v38 = vunpack.i.h.bf16 %v2149_v18 }
 0x16e   : > { %1636 = vmatpush1.bf16.msra.mxu0 %v1635_v34  ;;  %1700 = vmatpush3.bf16.msra.mxu1 %v3529_v28  ;;  %v740_v42 = vsel %vm723_vm8, %v2115_v44, %v2116_v9  ;;  %v741_v54 = vsel %vm723_vm8, %v2116_v9, %v2076_v7  ;;  %v739_v36 = vsel %vm723_vm8, %v2121_v51, %v2115_v44 }
 0x16f   : > { %v2129_v62 = vpop.permute.xlu1 %2128  ;;  %v1637_v39 = vpack.c.bf16 %v740_v42, %v737_v17  ;;  %v1701_v19 = vpack.c.bf16 %v741_v54, %v738_v53  ;;  %v1639_v37 = vpack.c.bf16 %v739_v36, %v736_v1  ;;  %v748_v32 = vsel %vm723_vm8, %v2150_v41, %v2140_v21  ;;  %v3534_v21 = vld [vmem:[#allocation15_spill] sm:$0xff] }
 0x170   : > { %v2131_v3 = vunpack.i.h.bf16 %v2129_v62  ;;  %v2130_v61 = vunpack.i.l.bf16 %v2129_v62  ;;  %v3318_v2 = vpop.permute.xlu0 %2158  ;;  %v3532_v9 = vpack.c.bf16 %v3530_v24, %v3531_v12  ;;  %v1057_v12 = vld [vmem:[#allocation5] sm:$0xff] }
 0x171   : > { %1638 = vmatprep.subr.bf16.mxu0 %v1637_v39  ;;  %1702 = vmatprep.subr.bf16.mxu1 %v1701_v19  ;;  %v2161_v17 = vunpack.i.h.bf16 %v3318_v2  ;;  %v2160_v7 = vunpack.i.l.bf16 %v3318_v2 }
 0x172   : > { %1640 = vmatpush1.bf16.msra.mxu0 %v1639_v37  ;;  %1704 = vmatpush3.bf16.msra.mxu1 %v3126_v5  ;;  %v746_v26 = vsel %vm723_vm8, %v2130_v61, %v2131_v3  ;;  %v747_v14 = vsel %vm723_vm8, %v2131_v3, %v2081_v47  ;;  %v745_v40 = vsel %vm723_vm8, %v2136_v31, %v2130_v61 }
 0x173   : > { %v2144_v43 = vpop.permute.xlu1 %2143  ;;  %v1641_v55 = vpack.c.bf16 %v746_v26, %v743_v16  ;;  %v1705_v60 = vpack.c.bf16 %v747_v14, %v744_v56  ;;  %v1643_v20 = vpack.c.bf16 %v745_v40, %v742_v8  ;;  %v755_v44 = vsel %vm723_vm8, %v2160_v7, %v2161_v17 }
 0x174   : > { %v2146_v58 = vunpack.i.h.bf16 %v2144_v43  ;;  %v2145_v29 = vunpack.i.l.bf16 %v2144_v43  ;;  %v2169_v4 = vpop.permute.xlu0 %2168 }
 0x175   : > { %1642 = vmatprep.subr.bf16.mxu0 %v1641_v55  ;;  %1706 = vmatprep.subr.bf16.mxu1 %v1705_v60  ;;  %v2170_v6 = vunpack.i.l.bf16 %v2169_v4  ;;  %v2171_v59 = vunpack.i.h.bf16 %v2169_v4 }
 0x176   : > { %1644 = vmatpush1.bf16.msra.mxu0 %v1643_v20  ;;  %1708 = vmatpush3.bf16.msra.mxu1 %v3142_v48  ;;  %v752_v5 = vsel %vm723_vm8, %v2145_v29, %v2146_v58  ;;  %v751_v25 = vsel %vm723_vm8, %v2151_v38, %v2145_v29 }
 0x177   : > { %v2154_v10 = vpop.permute.xlu1 %2153  ;;  %v1645_v11 = vpack.c.bf16 %v752_v5, %v749_v30  ;;  %v1647_v50 = vpack.c.bf16 %v751_v25, %v748_v32  ;;  %v754_v57 = vsel %vm723_vm8, %v2170_v6, %v2160_v7 }
 0x178   : > { %v2156_v33 = vunpack.i.h.bf16 %v2154_v10  ;;  %v2155_v63 = vunpack.i.l.bf16 %v2154_v10  ;;  %v2179_v23 = vpop.permute.xlu0 %2178 }
 0x179   : > { %1646 = vmatprep.subr.bf16.mxu0 %v1645_v11  ;;  %v2181_v36 = vunpack.i.h.bf16 %v2179_v23  ;;  %v2180_v47 = vunpack.i.l.bf16 %v2179_v23 }
 0x17a   : > { %1648 = vmatpush1.bf16.msra.mxu0 %v1647_v50  ;;  %v750_v48 = vsel %vm723_vm8, %v2141_v35, %v2155_v63  ;;  %v753_v13 = vsel %vm723_vm8, %v2146_v58, %v2156_v33  ;;  %v3533_v35 = vld [vmem:[#allocation14_spill] sm:$0xff] }
 0x17b   : > { %v2164_v46 = vpop.permute.xlu1 %2163  ;;  %v1709_v51 = vpack.c.bf16 %v753_v13, %v750_v48  ;;  %v3535_v56 = vpack.c.bf16 %v3533_v35, %v3534_v21  ;;  %v761_v8 = vsel %vm723_vm8, %v2180_v47, %v2181_v36 }
 0x17c   : > { %v2166_v15 = vunpack.i.h.bf16 %v2164_v46  ;;  %v2165_v27 = vunpack.i.l.bf16 %v2164_v46  ;;  %v2189_v34 = vpop.permute.xlu0 %2188 }
 0x17d   : > { %1710 = vmatprep.subr.bf16.mxu1 %v1709_v51  ;;  %v2190_v62 = vunpack.i.l.bf16 %v2189_v34  ;;  %v2191_v3 = vunpack.i.h.bf16 %v2189_v34 }
 0x17e   : > { %1712 = vmatpush3.bf16.msra.mxu1 %v3532_v9  ;;  %v758_v18 = vsel %vm723_vm8, %v2165_v27, %v2166_v15  ;;  %v757_v45 = vsel %vm723_vm8, %v2171_v59, %v2165_v27 }
 0x17f   : > { %v2174_v53 = vpop.permute.xlu1 %2173  ;;  %v1649_v1 = vpack.c.bf16 %v758_v18, %v755_v44  ;;  %v1651_v52 = vpack.c.bf16 %v757_v45, %v754_v57  ;;  %v760_v26 = vsel %vm723_vm8, %v2190_v62, %v2180_v47  ;;  %v1060_v18 = vld [vmem:[#allocation5 + $0x18] sm:$0xff] }
 0x180   : > { %v2176_v28 = vunpack.i.h.bf16 %v2174_v53  ;;  %v2175_v42 = vunpack.i.l.bf16 %v2174_v53  ;;  %v2199_v54 = vpop.permute.xlu0 %2198 }
 0x181   : > { %1650 = vmatprep.subr.bf16.mxu0 %v1649_v1  ;;  %v2201_v58 = vunpack.i.h.bf16 %v2199_v54  ;;  %v2200_v29 = vunpack.i.l.bf16 %v2199_v54  ;;  %v3536_v54 = vld [vmem:[#allocation16_spill] sm:$0xff] }
 0x182   : > { %1652 = vmatpush1.bf16.msra.mxu0 %v1651_v52  ;;  %v756_v39 = vsel %vm723_vm8, %v2161_v17, %v2175_v42  ;;  %v759_v19 = vsel %vm723_vm8, %v2166_v15, %v2176_v28 }
 0x183   : > { %v2184_v37 = vpop.permute.xlu1 %2183  ;;  %v1713_v31 = vpack.c.bf16 %v759_v19, %v756_v39  ;;  %v767_v63 = vsel %vm723_vm8, %v2200_v29, %v2201_v58 }
 0x184   : > { %v2186_v61 = vunpack.i.h.bf16 %v2184_v37  ;;  %v2185_v2 = vunpack.i.l.bf16 %v2184_v37  ;;  %v2209_v16 = vpop.permute.xlu0 %2208  ;;  %v2557_v37 = vmov 0.0|0.0  }
 0x185   : > { %1714 = vmatprep.subr.bf16.mxu1 %v1713_v31  ;;  %v2210_v4 = vunpack.i.l.bf16 %v2209_v16  ;;  %v2211_v10 = vunpack.i.h.bf16 %v2209_v16 }
 0x186   : > { %1716 = vmatpush3.bf16.msra.mxu1 %v3535_v56  ;;  %v764_v41 = vsel %vm723_vm8, %v2185_v2, %v2186_v61  ;;  %v763_v14 = vsel %vm723_vm8, %v2191_v3, %v2185_v2 }
 0x187   : > { %v2194_v40 = vpop.permute.xlu1 %2193  ;;  %v1653_v43 = vpack.c.bf16 %v764_v41, %v761_v8  ;;  %v1655_v55 = vpack.c.bf16 %v763_v14, %v760_v26  ;;  %v766_v17 = vsel %vm723_vm8, %v2210_v4, %v2200_v29 }
 0x188   : > { %v2196_v60 = vunpack.i.h.bf16 %v2194_v40  ;;  %v2195_v20 = vunpack.i.l.bf16 %v2194_v40  ;;  %v3354_v38 = vpop.permute.xlu0 %2218 }
 0x189   : > { %1654 = vmatprep.subr.bf16.mxu0 %v1653_v43  ;;  %v2221_v15 = vunpack.i.h.bf16 %v3354_v38 }
 0x18a   : > { %1656 = vmatpush1.bf16.msra.mxu0 %v1655_v55  ;;  %v762_v30 = vsel %vm723_vm8, %v2181_v36, %v2195_v20  ;;  %v765_v5 = vsel %vm723_vm8, %v2186_v61, %v2196_v60  ;;  %v3537_v36 = vpack.c.bf16 %v3108_v22, %v3536_v54 }
 0x18b   : > { %v2204_v32 = vpop.permute.xlu1 %2203  ;;  %v1717_v25 = vpack.c.bf16 %v765_v5, %v762_v30 }
 0x18c   : > { %v2206_v11 = vunpack.i.h.bf16 %v2204_v32  ;;  %v2205_v50 = vunpack.i.l.bf16 %v2204_v32  ;;  %v2229_v33 = vpop.permute.xlu0 %2228 }
 0x18d   : > { %1718 = vmatprep.subr.bf16.mxu1 %v1717_v25  ;;  %v2230_v27 = vunpack.i.l.bf16 %v2229_v33  ;;  %v2231_v57 = vunpack.i.h.bf16 %v2229_v33 }
 0x18e   : > { %1720 = vmatpush3.bf16.msra.mxu1 %v3167_v49  ;;  %v770_v23 = vsel %vm723_vm8, %v2205_v50, %v2206_v11  ;;  %v769_v7 = vsel %vm723_vm8, %v2211_v10, %v2205_v50  ;;  %v2220_v49 = vunpack.i.l.bf16 %v3354_v38 }
 0x18f   : > { %v2214_v6 = vpop.permute.xlu1 %2213  ;;  %v1657_v48 = vpack.c.bf16 %v770_v23, %v767_v63  ;;  %v1659_v13 = vpack.c.bf16 %v769_v7, %v766_v17 }
 0x190   : > { %v2216_v46 = vunpack.i.h.bf16 %v2214_v6  ;;  %v2215_v51 = vunpack.i.l.bf16 %v2214_v6  ;;  %v3363_v59 = vpop.permute.xlu0 %2238  ;;  %v950_v52 = vsel %vm948_vm9, %v2220_v49, %v2221_v15  ;;  %v949_v28 = vsel %vm948_vm9, %v2230_v27, %v2220_v49 }
 0x191   : > { %1658 = vmatprep.subr.bf16.mxu0 %v1657_v48  ;;  %v2241_v2 = vunpack.i.h.bf16 %v3363_v59  ;;  %v2240_v22 = vunpack.i.l.bf16 %v3363_v59 }
 0x192   : > { %1660 = vmatpush1.bf16.msra.mxu0 %v1659_v13  ;;  %v768_v34 = vsel %vm723_vm8, %v2201_v58, %v2215_v51  ;;  %v771_v24 = vsel %vm723_vm8, %v2206_v11, %v2216_v46 }
 0x193   : > { %v2224_v9 = vpop.permute.xlu1 %2223  ;;  %v1721_v44 = vpack.c.bf16 %v771_v24, %v768_v34  ;;  %v956_v60 = vsel %vm948_vm9, %v2240_v22, %v2241_v2 }
 0x194   : > { %v2226_v45 = vunpack.i.h.bf16 %v2224_v9  ;;  %v2225_v53 = vunpack.i.l.bf16 %v2224_v9  ;;  %v2249_v1 = vpop.permute.xlu0 %2248 }
 0x195   : > { %1722 = vmatprep.subr.bf16.mxu1 %v1721_v44  ;;  %1136 = vmatmul.mubr.f32.vlgmr.msra.gmra.mrb[0].mxu0 %v1057_v12  ;;  %v2250_v16 = vunpack.i.l.bf16 %v2249_v1  ;;  %v2251_v41 = vunpack.i.h.bf16 %v2249_v1 }
 0x196   : > { %v952_v42 = vsel %vm948_vm9, %v2231_v57, %v2225_v53  ;;  %1724 = vmatpush3.bf16.msra.mxu1 %v3537_v36  ;;  %v953_v47 = vsel %vm948_vm9, %v2225_v53, %v2226_v45  ;;  %1556 = vmatprep.mubr.msk.f32.mxu0 %vm1067_vm10, %v1060_v18 }
 0x197   : > { %v1663_v62 = vpack.c.bf16 %v952_v42, %v949_v28  ;;  %v2234_v39 = vpop.permute.xlu1 %2233  ;;  %v1661_v19 = vpack.c.bf16 %v953_v47, %v950_v52  ;;  %1725 = vmatprep.subr.bf16.mxu1 %v2557_v37  ;;  %v955_v43 = vsel %vm948_vm9, %v2250_v16, %v2240_v22 }
 0x198   : > { %v2236_v31 = vunpack.i.h.bf16 %v2234_v39  ;;  %v2235_v3 = vunpack.i.l.bf16 %v2234_v39  ;;  %v2259_v61 = vpop.permute.xlu0 %2258 }
 0x199   : > { %1662 = vmatprep.subr.bf16.mxu0 %v1661_v19  ;;  %1278 = vmatmul.mubr.f32.vlgmr.msra.gmra.mrb[0].mxu1 %v1057_v12  ;;  %v2261_v32 = vunpack.i.h.bf16 %v2259_v61  ;;  %v2260_v25 = vunpack.i.l.bf16 %v2259_v61 }
 0x19a   : > { %v951_v35 = vsel %vm948_vm9, %v2221_v15, %v2235_v3  ;;  %v954_v21 = vsel %vm948_vm9, %v2226_v45, %v2236_v31  ;;  %1664 = vmatpush1.bf16.msra.mxu0 %v1663_v62  ;;  %1557 = vmatprep.mubr.msk.f32.mxu1 %vm1067_vm10, %v1060_v18 }
 0x19b   : > { %v1726_v56 = vpack.c.bf16 %v954_v21, %v951_v35  ;;  %v2244_v8 = vpop.permute.xlu1 %2243  ;;  %v962_v46 = vsel %vm948_vm9, %v2260_v25, %v2261_v32 }
 0x19c   : > { %v2246_v26 = vunpack.i.h.bf16 %v2244_v8  ;;  %v2245_v14 = vunpack.i.l.bf16 %v2244_v8  ;;  %v2269_v40 = vpop.permute.xlu0 %2268 }
 0x19d   : > { %1727 = vmatpush1.bf16.msra.mxu1 %v1726_v56  ;;  %v2270_v10 = vunpack.i.l.bf16 %v2269_v40  ;;  %v2271_v23 = vunpack.i.h.bf16 %v2269_v40 }
 0x19e   : > { %v958_v55 = vsel %vm948_vm9, %v2251_v41, %v2245_v14  ;;  %v959_v20 = vsel %vm948_vm9, %v2245_v14, %v2246_v26  ;;  %1728 = vmatprep.subr.bf16.mxu1 %v2557_v37 }
 0x19f   : > { %v1667_v38 = vpack.c.bf16 %v958_v55, %v955_v43  ;;  %v2254_v58 = vpop.permute.xlu1 %2253  ;;  %v1665_v29 = vpack.c.bf16 %v959_v20, %v956_v60  ;;  %v961_v48 = vsel %vm948_vm9, %v2270_v10, %v2260_v25 }
 0x1a0   : > { %v2256_v4 = vunpack.i.h.bf16 %v2254_v58  ;;  %v2255_v30 = vunpack.i.l.bf16 %v2254_v58  ;;  %v2279_v5 = vpop.permute.xlu0 %2278 }
 0x1a1   : > { %1666 = vmatprep.subr.bf16.mxu0 %v1665_v29  ;;  %v2281_v12 = vunpack.i.h.bf16 %v2279_v5  ;;  %v2280_v9 = vunpack.i.l.bf16 %v2279_v5 }
 0x1a2   : > { %v957_v11 = vsel %vm948_vm9, %v2241_v2, %v2255_v30  ;;  %v960_v50 = vsel %vm948_vm9, %v2246_v26, %v2256_v4  ;;  %1668 = vmatpush1.bf16.msra.mxu0 %v1667_v38 }
 0x1a3   : > { %v1729_v33 = vpack.c.bf16 %v960_v50, %v957_v11  ;;  %v2264_v63 = vpop.permute.xlu1 %2263  ;;  %v968_v47 = vsel %vm948_vm9, %v2280_v9, %v2281_v12 }
 0x1a4   : > { %v2266_v17 = vunpack.i.h.bf16 %v2264_v63  ;;  %v2265_v7 = vunpack.i.l.bf16 %v2264_v63  ;;  %v2289_v6 = vpop.permute.xlu0 %2288 }
 0x1a5   : > { %1730 = vmatpush1.bf16.msra.mxu1 %v1729_v33  ;;  %v2290_v44 = vunpack.i.l.bf16 %v2289_v6  ;;  %v2291_v1 = vunpack.i.h.bf16 %v2289_v6 }
 0x1a6   : > { %v964_v13 = vsel %vm948_vm9, %v2271_v23, %v2265_v7  ;;  %v965_v51 = vsel %vm948_vm9, %v2265_v7, %v2266_v17  ;;  %1731 = vmatprep.subr.bf16.mxu1 %v2557_v37 }
 0x1a7   : > { %v1671_v59 = vpack.c.bf16 %v964_v13, %v961_v48  ;;  %v2274_v15 = vpop.permute.xlu1 %2273  ;;  %v1669_v49 = vpack.c.bf16 %v965_v51, %v962_v46  ;;  %v967_v54 = vsel %vm948_vm9, %v2290_v44, %v2280_v9 }
 0x1a8   : > { %v2276_v27 = vunpack.i.h.bf16 %v2274_v15  ;;  %v2275_v34 = vunpack.i.l.bf16 %v2274_v15  ;;  %v2299_v24 = vpop.permute.xlu0 %2298 }
 0x1a9   : > { %1670 = vmatprep.subr.bf16.mxu0 %v1669_v49  ;;  %v2301_v22 = vunpack.i.h.bf16 %v2299_v24  ;;  %v2300_v16 = vunpack.i.l.bf16 %v2299_v24 }
 0x1aa   : > { %v963_v18 = vsel %vm948_vm9, %v2261_v32, %v2275_v34  ;;  %v966_v57 = vsel %vm948_vm9, %v2266_v17, %v2276_v27  ;;  %1672 = vmatpush1.bf16.msra.mxu0 %v1671_v59 }
 0x1ab   : > { %v1732_v45 = vpack.c.bf16 %v966_v57, %v963_v18  ;;  %v2284_v53 = vpop.permute.xlu1 %2283  ;;  %v974_v20 = vsel %vm948_vm9, %v2300_v16, %v2301_v22 }
 0x1ac   : > { %v2286_v52 = vunpack.i.h.bf16 %v2284_v53  ;;  %v2285_v28 = vunpack.i.l.bf16 %v2284_v53  ;;  %v2309_v42 = vpop.permute.xlu0 %2308 }
 0x1ad   : > { %1733 = vmatpush1.bf16.msra.mxu1 %v1732_v45  ;;  %v2310_v35 = vunpack.i.l.bf16 %v2309_v42  ;;  %v2311_v26 = vunpack.i.h.bf16 %v2309_v42 }
 0x1ae   : > { %v970_v36 = vsel %vm948_vm9, %v2291_v1, %v2285_v28  ;;  %v971_v62 = vsel %vm948_vm9, %v2285_v28, %v2286_v52  ;;  %1734 = vmatprep.subr.bf16.mxu1 %v2557_v37 }
 0x1af   : > { %v1675_v39 = vpack.c.bf16 %v970_v36, %v967_v54  ;;  %v2294_v19 = vpop.permute.xlu1 %2293  ;;  %v1673_v31 = vpack.c.bf16 %v971_v62, %v968_v47  ;;  %v973_v55 = vsel %vm948_vm9, %v2310_v35, %v2300_v16 }
 0x1b0   : > { %v2296_v3 = vunpack.i.h.bf16 %v2294_v19  ;;  %v2295_v61 = vunpack.i.l.bf16 %v2294_v19  ;;  %v2319_v2 = vpop.permute.xlu0 %2318 }
 0x1b1   : > { %1674 = vmatprep.subr.bf16.mxu0 %v1673_v31  ;;  %v2321_v25 = vunpack.i.h.bf16 %v2319_v2  ;;  %v2320_v10 = vunpack.i.l.bf16 %v2319_v2 }
 0x1b2   : > { %v969_v21 = vsel %vm948_vm9, %v2281_v12, %v2295_v61  ;;  %v972_v56 = vsel %vm948_vm9, %v2286_v52, %v2296_v3  ;;  %1676 = vmatpush1.bf16.msra.mxu0 %v1675_v39 }
 0x1b3   : > { %v1735_v8 = vpack.c.bf16 %v972_v56, %v969_v21  ;;  %v2304_v41 = vpop.permute.xlu1 %2303  ;;  %v980_v51 = vsel %vm948_vm9, %v2320_v10, %v2321_v25 }
 0x1b4   : > { %v2306_v14 = vunpack.i.h.bf16 %v2304_v41  ;;  %v2305_v40 = vunpack.i.l.bf16 %v2304_v41  ;;  %v2329_v43 = vpop.permute.xlu0 %2328 }
 0x1b5   : > { %1736 = vmatpush1.bf16.msra.mxu1 %v1735_v8  ;;  %v2330_v11 = vunpack.i.l.bf16 %v2329_v43  ;;  %v2331_v17 = vunpack.i.h.bf16 %v2329_v43 }
 0x1b6   : > { %v976_v60 = vsel %vm948_vm9, %v2311_v26, %v2305_v40  ;;  %v977_v38 = vsel %vm948_vm9, %v2305_v40, %v2306_v14  ;;  %1737 = vmatprep.subr.bf16.mxu1 %v2557_v37 }
 0x1b7   : > { %v1679_v58 = vpack.c.bf16 %v976_v60, %v973_v55  ;;  %v2314_v29 = vpop.permute.xlu1 %2313  ;;  %v1677_v4 = vpack.c.bf16 %v977_v38, %v974_v20  ;;  %v979_v13 = vsel %vm948_vm9, %v2330_v11, %v2320_v10 }
 0x1b8   : > { %v2316_v30 = vunpack.i.h.bf16 %v2314_v29  ;;  %v2315_v5 = vunpack.i.l.bf16 %v2314_v29  ;;  %v2339_v32 = vpop.permute.xlu0 %2338 }
 0x1b9   : > { %1678 = vmatprep.subr.bf16.mxu0 %v1677_v4  ;;  %v2341_v12 = vunpack.i.h.bf16 %v2339_v32  ;;  %v2340_v44 = vunpack.i.l.bf16 %v2339_v32 }
 0x1ba   : > { %v975_v50 = vsel %vm948_vm9, %v2301_v22, %v2315_v5  ;;  %v978_v33 = vsel %vm948_vm9, %v2306_v14, %v2316_v30  ;;  %1680 = vmatpush1.bf16.msra.mxu0 %v1679_v58 }
 0x1bb   : > { %v1738_v63 = vpack.c.bf16 %v978_v33, %v975_v50  ;;  %v2324_v23 = vpop.permute.xlu1 %2323  ;;  %v986_v47 = vsel %vm948_vm9, %v2340_v44, %v2341_v12 }
 0x1bc   : > { %v2326_v7 = vunpack.i.h.bf16 %v2324_v23  ;;  %v2325_v6 = vunpack.i.l.bf16 %v2324_v23  ;;  %v2349_v48 = vpop.permute.xlu0 %2348 }
 0x1bd   : > { %1739 = vmatpush1.bf16.msra.mxu1 %v1738_v63  ;;  %v2350_v18 = vunpack.i.l.bf16 %v2349_v48  ;;  %v2351_v52 = vunpack.i.h.bf16 %v2349_v48  ;;  %v1059_v63 = vld [vmem:[#allocation5 + $0x10] sm:$0xff] }
 0x1be   : > { %v982_v46 = vsel %vm948_vm9, %v2331_v17, %v2325_v6  ;;  %v983_v59 = vsel %vm948_vm9, %v2325_v6, %v2326_v7  ;;  %1740 = vmatprep.subr.bf16.mxu1 %v2557_v37  ;;  %v1359_v6 = vlaneseq }
 0x1bf   : > { %v1683_v15 = vpack.c.bf16 %v982_v46, %v979_v13  ;;  %v2334_v49 = vpop.permute.xlu1 %2333  ;;  %v1681_v27 = vpack.c.bf16 %v983_v59, %v980_v51  ;;  %v985_v54 = vsel %vm948_vm9, %v2350_v18, %v2340_v44  ;;  %v1357_v46 = vld [vmem:[%s3491_s3] sm:$0x7] }
 0x1c0   : > { %v2336_v34 = vunpack.i.h.bf16 %v2334_v49  ;;  %v2335_v24 = vunpack.i.l.bf16 %v2334_v49  ;;  %v2359_v9 = vpop.permute.xlu0 %2358  ;;  %v1360_v48 = vshrl.u32 %v1359_v6, 7 }
 0x1c1   : > { %1682 = vmatprep.subr.bf16.mxu0 %v1681_v27  ;;  %v2361_v22 = vunpack.i.h.bf16 %v2359_v9  ;;  %v2360_v16 = vunpack.i.l.bf16 %v2359_v9 }
 0x1c2   : > { %v981_v57 = vsel %vm948_vm9, %v2321_v25, %v2335_v24  ;;  %v984_v45 = vsel %vm948_vm9, %v2326_v7, %v2336_v34  ;;  %1684 = vmatpush1.bf16.msra.mxu0 %v1683_v15  ;;  %v1361_v13 = vsub.s32 0, %v1360_v48  ;;  %v1365_v51 = vsub.s32 1, %v1360_v48 }
 0x1c3   : > { %v1741_v53 = vpack.c.bf16 %v984_v45, %v981_v57  ;;  %v2344_v1 = vpop.permute.xlu1 %2343  ;;  %v992_v20 = vsel %vm948_vm9, %v2360_v16, %v2361_v22  ;;  %v1369_v59 = vsub.s32 2, %v1360_v48 }
 0x1c4   : > { %v2346_v28 = vunpack.i.h.bf16 %v2344_v1  ;;  %v2345_v42 = vunpack.i.l.bf16 %v2344_v1  ;;  %v2369_v19 = vpop.permute.xlu0 %2368  ;;  %v1362_v49 = vrot.slane %v1357_v46, %v1361_v13 }
 0x1c5   : > { %1742 = vmatpush1.bf16.msra.mxu1 %v1741_v53  ;;  %v2370_v35 = vunpack.i.l.bf16 %v2369_v19  ;;  %v2371_v26 = vunpack.i.h.bf16 %v2369_v19  ;;  %v1370_v44 = vrot.slane %v1357_v46, %v1369_v59 }
 0x1c6   : > { %v988_v36 = vsel %vm948_vm9, %v2351_v52, %v2345_v42  ;;  %v989_v62 = vsel %vm948_vm9, %v2345_v42, %v2346_v28  ;;  %1743 = vmatprep.subr.bf16.mxu1 %v2557_v37 }
 0x1c7   : > { %v1687_v39 = vpack.c.bf16 %v988_v36, %v985_v54  ;;  %v2354_v31 = vpop.permute.xlu1 %2353  ;;  %v1685_v3 = vpack.c.bf16 %v989_v62, %v986_v47  ;;  %v991_v55 = vsel %vm948_vm9, %v2370_v35, %v2360_v16 }
 0x1c8   : > { %v2356_v61 = vunpack.i.h.bf16 %v2354_v31  ;;  %v2355_v2 = vunpack.i.l.bf16 %v2354_v31  ;;  %v1048_v43 = vpop.permute.xlu0 %1047 }
 0x1c9   : > { %1686 = vmatprep.subr.bf16.mxu0 %v1685_v3 }
 0x1ca   : > { %v987_v21 = vsel %vm948_vm9, %v2341_v12, %v2355_v2  ;;  %v990_v56 = vsel %vm948_vm9, %v2346_v28, %v2356_v61  ;;  %1688 = vmatpush1.bf16.msra.mxu0 %v1687_v39 }
 0x1cb   : > { %v1744_v8 = vpack.c.bf16 %v990_v56, %v987_v21  ;;  %v2364_v41 = vpop.permute.xlu1 %2363 }
 0x1cc   : > { %v2366_v14 = vunpack.i.h.bf16 %v2364_v41  ;;  %v2365_v40 = vunpack.i.l.bf16 %v2364_v41  ;;  %v1046_v10 = vpop.permute.xlu0 %1045 }
 0x1cd   : > { %1745 = vmatpush1.bf16.msra.mxu1 %v1744_v8  ;;  %v1052_v23 = vsel %vm1051_vm11, %v1046_v10, %v1048_v43 }
 0x1ce   : > { %v994_v60 = vsel %vm948_vm9, %v2371_v26, %v2365_v40  ;;  %v995_v38 = vsel %vm948_vm9, %v2365_v40, %v2366_v14  ;;  %1746 = vmatprep.subr.bf16.mxu1 %v2557_v37 }
 0x1cf   : > { %v1691_v58 = vpack.c.bf16 %v994_v60, %v991_v55  ;;  %v2374_v29 = vpop.permute.xlu1 %2373  ;;  %v1689_v4 = vpack.c.bf16 %v995_v38, %v992_v20 }
 0x1d0   : > { %v2376_v30 = vunpack.i.h.bf16 %v2374_v29  ;;  %v2375_v5 = vunpack.i.l.bf16 %v2374_v29 }
 0x1d1   : > { %1690 = vmatprep.subr.bf16.mxu0 %v1689_v4 }
 0x1d2   : > { %v993_v32 = vsel %vm948_vm9, %v2361_v22, %v2375_v5  ;;  %v996_v25 = vsel %vm948_vm9, %v2366_v14, %v2376_v30  ;;  %1692 = vmatpush1.bf16.msra.mxu0 %v1691_v58 }
 0x1d3   : > { %v1747_v11 = vpack.c.bf16 %v996_v25, %v993_v32  ;;  %v1050_v50 = vpop.permute.xlu1 %1049 }
 0x1d4   : > { %v1053_v33 = vsel %vm1051_vm11, %v1048_v43, %v1050_v50 }
 0x1d5   : > { %1174 = vmatprep.subr.mxu0 %v1053_v33  ;;  %1748 = vmatpush1.bf16.msra.mxu1 %v1747_v11 }
 0x1d6   : > { %1175 = vmatpush1.msra.mxu0 %v1052_v23  ;;  %1315 = vmatprep.subr.mxu1 %v2556_v0  ;;  %v1366_v0 = vrot.slane %v1357_v46, %v1365_v51 }
 0x1d7   : > { %1207 = vmatmul.mubr.f32.vlgmr.msra.gmra.mrb[0].mxu0 %v1059_v63 }
 0x1d9   : > { %1316 = vmatpush1.msra.mxu1 %v1050_v50 }
 0x1da   : > { %1348 = vmatmul.mubr.f32.vlgmr.msra.gmra.mrb[2].mxu1 %v1059_v63 }
 0x1e4   : > { %v1065_v15 = vpop.permute.xlu1 %1064 }
 0x26c   : > { %v1594_v37 = vpop.f32.mrb[0].mxu1 }
 0x26d   : > { %v1595_v17 = vpop.f32.mrb[1].mxu1 }
 0x26e   : > { %v1596_v7 = vadd.f32 %v1595_v17, %v1594_v37 }
 0x270   : > { %v1280_v9 = vadd.f32 %v1596_v7, %v1065_v15 }
 0x2aa   : > { %v1208_v27 = vpop.f32.mrb[0].mxu0 }
 0x2ab   : > { %v1749_v34 = vadd.f32 %v1208_v27, %v1065_v15  ;;  %v1210_v24 = vpop.f32.mrb[1].mxu0 }
 0x2ac   : > { %v1750_v12 = vadd.f32 %v1210_v24, %v1065_v15 }
 0x2ad   : > { %1353 = vst [vmem:[%s271_s8] sm:$0xff] %v1749_v34  ;;  %v1374_v18 = vmul.f32 %v1749_v34, %v1362_v49  ;;  %v1349_v57 = vpop.f32.mrb[2].mxu1 }
 0x2ae   : > { %1354 = vst [vmem:[%s271_s8 + $0x8] sm:$0xff] %v1750_v12  ;;  %v1375_v45 = vmul.f32 %v1750_v12, %v1366_v0  ;;  %v1350_v53 = vadd.f32 %v1349_v57, %v1280_v9  ;;  %v1351_v1 = vpop.f32.mrb[3].mxu1 }
 0x2af   : > { %v1382_v52 = vmul.f32 %v1374_v18, %v1374_v18 }
 0x2b0   : > { %v1377_v28 = vadd.f32 %v1375_v45, %v1374_v18  ;;  %v1383_v42 = vmul.f32 %v1375_v45, %v1375_v45  ;;  %1356 = vst.msk [vmem:[%s271_s8 + $0x10] sm:$0xff] %vm1355_vm12, %v1350_v53  ;;  %v1376_v54 = vmul.f32 %v1370_v44, %v1350_v53 }
 0x2b2   : > { %v1378_v36 = vsel %vm1355_vm12, %v1376_v54, 0.0  ;;  %v1384_v47 = vmul.f32 %v1376_v54, %v1376_v54  ;;  %v1385_v62 = vadd.f32 %v1383_v42, %v1382_v52 }
 0x2b3   : > { %v1379_v39 = vadd.f32 %v1378_v36, %v1377_v28 }
 0x2b4   : > { %v1386_v19 = vsel %vm1355_vm12, %v1384_v47, 0.0 }
 0x2b5   : > { %1380 = vadd.xlane.f32.xlu0 %v1379_v39  ;;  %v1387_v31 = vadd.f32 %v1386_v19, %v1385_v62 }
 0x2b7   : > { %1388 = vadd.xlane.f32.xlu1 %v1387_v31 }
 0x2b8   : > { %2452 = shalt.err (!%p2449_p10)
}
 0x2b9   : > { %s2453_s21 = scalar_lea.hbm %s3441_s26, 384  ;;  %s2457_s27 = scalar_lea.hbm %s3492_s4, 768 }
 0x2ba   : > { %p2454_p4 = scmp.ne.s32.totalorder %s3441_s26, %s2453_s21  ;;  %p2458_p3 = scmp.lt.u32.totalorder %s3441_s26, %s3492_s4 }
 0x2bb   : > { %p2459_p11 = scmp.lt.u32.totalorder %s2457_s27, %s2453_s21  ;;  %p2461_p6 = scmp.lt.u32.totalorder %s2453_s21, %s3441_s26 }
 0x2bc   : > { %p2455_p1 = pnand %p2454_p4, %p2690_p13 }
 0x2bd   : > { %p2460_p2 = por %p2459_p11, %p2458_p3 }
 0x2be   : > { %p2456_p7 = pneg %p2455_p1 }
 0x2bf   : > { %p2462_p8 = por %p2461_p6, %p2460_p2 }
 0x2c1   : > { %p2463_p9 = pnand %p2462_p8, %p2456_p7 }
 0x2c3   : > { %2466 = shalt.err (!%p2463_p9)
}
 0x2c4   : > { %1761 = dma.vmem_to_hbm [thread:$0]  (%p2690_p13), %s1426_s11, 384, %s3441_s26, %s1405_s30   ;;  %v1396_v3 = vld [vmem:[%s3259_s25] sm:$0xff]  ;;  %vm1398_vm13 = vcmask 7168   ;;  %vm1402_vm14 = vcmask 15368  }
 0x342   : > { %v1381_v61 = vpop.xlane.xlu0 %1380 }
 0x343   : > { %v1397_v2 = vadd.f32 %v1396_v3, %v1381_v61 }
 0x344   : > { %v1389_v22 = vpop.xlane.xlu1 %1388 }
 0x345   : > { %1399 = vst.msk [vmem:[%s3259_s25] sm:$0xff] %vm1398_vm13, %v1397_v2 }
 0x34c   : > { %v1400_v16 = vld [vmem:[%s3259_s25] sm:$0xff] }
 0x34d   : > { %v1401_v35 = vadd.f32 %v1400_v16, %v1389_v22 }
 0x34f   : > { %1403 = vst.msk [vmem:[%s3259_s25] sm:$0xff] %vm1402_vm14, %v1401_v35 }
 0x350 PF: > { %s1440_s13 = sand.u32 1, %s2505_s18   ;;  %p3538_p12 = scmp.ne.s32.totalorder %s3508_s29, 0 }
 0x351   : > { %p3539_p0 = scmp.ge.s32.totalorder %s2525_s23, 2  ;;  %s1441_s16 = scalar_lea.sflag [#allocation4], %s1440_s13 }
 0x353   : > { %p1772_p5 = pnand %p3539_p0, %p3538_p12 }
 0x355   : > { %2500 = dma.done.wait (!%p1772_p5), %s1441_s16, 384  }
 0x356   : > { %2502 = vsyncadd (!%p1772_p5), %s1441_s16, 4294966912  ;;  %s23_s23 = sadd.s32 1, %s2525_s23   ;;  %s3540_s18 = smov %s2509_s19 }
 0x357   : > { %p20_p13 = scmp.ge.s32.totalorder %s23_s23, 4   ;;  %s3541_s19 = smov %s2513_s20 }
 0x358   : > { %s3542_s20 = smov %s2698_s15  ;;  %s3543_s21 = smov %s2521_s22 }
 0x359   : > { %s3544_s22 = smov %s3546_s9  ;;  %22 = sbr.rel (!%p20_p13) target bundleno = 7 (0x7), region = 101 }
 0x360   :  { %1453 = vsyncpa [#allocation3], 1 }
 0x361   :  { %1455 = vsyncpa [#allocation3 + $0x1], 1 }
 0x362   :  { %1456 = vsyncpa [#allocation6], 1 }
 0x363   :  { %1457 = vsyncpa [#allocation4], 1 }
 0x364   :  { %1459 = vsyncpa [#allocation4 + $0x1], 1 }

</bundles_post_ra>
